<compile_context>
chip_gen: v7x
topology: tpu7x:2x2x1
jax: 0.10.0
libtpu: 0.0.40
codegen_flags: <defaults>
</compile_context>

<pallas_src>
import jax
import jax.numpy as jnp
from jax.experimental import pallas as pl
from jax.experimental.pallas import tpu as pltpu

EPS = 1e-5
LANE = 128


def _bn_relu_layer(h, w, g_ref, beta_ref):
    """Linear (bias dropped) -> BatchNorm1d (training, batch stats) -> ReLU."""
    y = jnp.dot(h, w, preferred_element_type=jnp.float32)
    inv_b = 1.0 / y.shape[0]
    # One-pass stats over the batch (sublane) axis.
    s1 = jnp.sum(y, axis=0, keepdims=True)
    s2 = jnp.sum(y * y, axis=0, keepdims=True)
    mean = s1 * inv_b
    # Biased variance (PyTorch BN), clamped against rounding going negative.
    var = jnp.maximum(s2 * inv_b - mean * mean, 0.0)
    # Fold BN affine into per-feature scale/shift row vectors.
    scale = g_ref[...] * jax.lax.rsqrt(var + EPS)
    shift = beta_ref[...] - mean * scale
    return jnp.maximum(y * scale + shift, 0.0)


def mlp_kernel(x_ref,
               w1_ref, g1_ref, be1_ref,
               w2_hbm, g2_ref, be2_ref,
               w3_hbm, g3_ref, be3_ref,
               w4_hbm, g4_ref, be4_ref,
               w5_hbm, b5_ref,
               out_ref,
               w2_buf, w3_buf, w4_buf, w5_buf, sems):
    # Kick off the DMAs for every later-layer weight immediately so they
    # overlap layer-1..3 compute; only w1 had to be resident before entry.
    cp2 = pltpu.make_async_copy(w2_hbm, w2_buf, sems.at[0])
    cp3 = pltpu.make_async_copy(w3_hbm, w3_buf, sems.at[1])
    cp4 = pltpu.make_async_copy(w4_hbm, w4_buf, sems.at[2])
    cp5 = pltpu.make_async_copy(w5_hbm, w5_buf, sems.at[3])
    cp2.start()
    cp3.start()
    cp4.start()
    cp5.start()

    h = x_ref[...]
    h = _bn_relu_layer(h, w1_ref[...], g1_ref, be1_ref)   # 128(pad) -> 512
    cp2.wait()
    h = _bn_relu_layer(h, w2_buf[...], g2_ref, be2_ref)   # 512 -> 256
    cp3.wait()
    h = _bn_relu_layer(h, w3_buf[...], g3_ref, be3_ref)   # 256 -> 128
    cp4.wait()
    h = _bn_relu_layer(h, w4_buf[...], g4_ref, be4_ref)   # 128 -> 64
    cp5.wait()
    # Final 64 -> 1: VPU multiply + lane reduction (avoid a 1-column MXU op).
    out = jnp.sum(h * w5_buf[...], axis=-1, keepdims=True) + b5_ref[...]
    # Lane-dense store of a (B, 128) slab; wrapper slices column 0.
    out_ref[...] = jnp.broadcast_to(out, out_ref.shape).astype(out_ref.dtype)


def init_params(key, input_size):
    """Deterministic PyTorch-style init (U(-1/sqrt(fan_in), 1/sqrt(fan_in)))."""
    dims = [input_size, 512, 256, 128, 64, 1]
    params = []
    for i in range(5):
        fan_in, fan_out = dims[i], dims[i + 1]
        key, kw, kb = jax.random.split(key, 3)
        bound = 1.0 / jnp.sqrt(float(fan_in))
        # stored as (in, out) == PyTorch weight.T
        w = jax.random.uniform(kw, (fan_in, fan_out), jnp.float32, -bound, bound)
        b = jax.random.uniform(kb, (1, fan_out), jnp.float32, -bound, bound)
        params.append((w, b))
    bn_params = []
    for n in (512, 256, 128, 64):
        gamma = jnp.ones((1, n), jnp.float32)
        beta = jnp.zeros((1, n), jnp.float32)
        bn_params.append((gamma, beta))
    return params, bn_params


def prepare_params(params, bn_params):
    """One-time prep: pad w1 to a full lane group, transpose w5, drop b1..b4."""
    F = params[0][0].shape[0]
    Fp = max(LANE, ((F + LANE - 1) // LANE) * LANE)
    w1 = params[0][0]
    if Fp != F:
        # Zero-pad the contracted dim (exact in fp since padded products are 0).
        w1 = jnp.pad(w1, ((0, Fp - F), (0, 0)))
    flat = [w1, bn_params[0][0], bn_params[0][1]]
    for i in (1, 2, 3):
        # Biases b1..b4 intentionally omitted (cancelled by training-mode BN).
        flat += [params[i][0], bn_params[i][0], bn_params[i][1]]
    w5, b5 = params[4]
    flat += [w5.T, b5]                        # w5 as a (1, 64) row vector
    return tuple(flat), Fp


@jax.jit
def timestamp_prediction_forward(x, prepared):
    (w1p, g1, be1,
     w2, g2, be2,
     w3, g3, be3,
     w4, g4, be4,
     w5_row, b5) = prepared

    B, F = x.shape
    Fp = w1p.shape[0]
    x_in = x.astype(jnp.float32)
    if Fp != F:
        x_in = jnp.pad(x_in, ((0, 0), (0, Fp - F)))   # fused under jit

    vmem = pl.BlockSpec(memory_space=pltpu.MemorySpace.VMEM)
    hbm = pl.BlockSpec(memory_space=pl.ANY)

    flat_args = (x_in, w1p, g1, be1,
                 w2, g2, be2,
                 w3, g3, be3,
                 w4, g4, be4,
                 w5_row, b5)
    in_specs = [vmem, vmem, vmem, vmem,
                hbm, vmem, vmem,
                hbm, vmem, vmem,
                hbm, vmem, vmem,
                hbm, vmem]

    weight_elems = Fp * 512 + 512 * 256 + 256 * 128 + 128 * 64 + 64 + 1
    cost = pl.CostEstimate(
        flops=2 * B * (Fp * 512 + 512 * 256 + 256 * 128 + 128 * 64 + 64),
        transcendentals=512 + 256 + 128 + 64,          # rsqrt per BN feature
        bytes_accessed=4 * (weight_elems + B * Fp + B * LANE),
    )

    out = pl.pallas_call(
        mlp_kernel,
        out_shape=jax.ShapeDtypeStruct((B, LANE), jnp.float32),
        in_specs=in_specs,
        out_specs=vmem,
        scratch_shapes=[
            pltpu.VMEM((512, 256), jnp.float32),
            pltpu.VMEM((256, 128), jnp.float32),
            pltpu.VMEM((128, 64), jnp.float32),
            pltpu.VMEM((1, 64), jnp.float32),
            pltpu.SemaphoreType.DMA((4,)),
        ],
        cost_estimate=cost,
    )(*flat_args)
    return out[:, :1]


def reference_forward(x, params, bn_params):
    """Pure-JAX reference faithful to the PyTorch module (with biases)."""
    h = x
    for i in range(4):
        w, b = params[i]
        g, be = bn_params[i]
        y = h @ w + b
        mean = jnp.mean(y, axis=0, keepdims=True)
        var = jnp.mean((y - mean) ** 2, axis=0, keepdims=True)
        y = (y - mean) * jax.lax.rsqrt(var + EPS) * g + be
        h = jnp.maximum(y, 0.0)
    w5, b5 = params[4]
    return h @ w5 + b5


if __name__ == "__main__":
    key = jax.random.PRNGKey(0)
    k_in, k_in2, k_param = jax.random.split(key, 3)

    input_size = 32
    params, bn_params = init_params(k_param, input_size)
    prepared, _ = prepare_params(params, bn_params)

    # Primary check: batch = 8 (sublane-aligned).
    batch = 8
    x = jax.random.normal(k_in, (batch, input_size), jnp.float32)
    out = jax.block_until_ready(timestamp_prediction_forward(x, prepared))
    ref = reference_forward(x, params, bn_params)
    assert out.shape == (batch, 1)
    assert jnp.allclose(out, ref, atol=2e-4, rtol=2e-4)

    # Secondary check: non-multiple-of-8 batch — verifies axis-0 BN stats do
    # not include sublane padding rows.
    x5 = jax.random.normal(k_in2, (5, input_size), jnp.float32)
    out5 = jax.block_until_ready(timestamp_prediction_forward(x5, prepared))
    ref5 = reference_forward(x5, params, bn_params)
    assert out5.shape == (5, 1)
    assert jnp.allclose(out5, ref5, atol=2e-4, rtol=2e-4)

    print("KERNEL_OK")
</pallas_src>

<mosaic_0001>
module attributes {stable_mosaic.version = 11 : i64} {
  func.func @mlp_kernel(%arg0: memref<8x128xf32, #tpu.memory_space<vmem>>, %arg1: memref<128x512xf32, #tpu.memory_space<vmem>>, %arg2: memref<1x512xf32, #tpu.memory_space<vmem>>, %arg3: memref<1x512xf32, #tpu.memory_space<vmem>>, %arg4: memref<512x256xf32, #tpu.memory_space<any>>, %arg5: memref<1x256xf32, #tpu.memory_space<vmem>>, %arg6: memref<1x256xf32, #tpu.memory_space<vmem>>, %arg7: memref<256x128xf32, #tpu.memory_space<any>>, %arg8: memref<1x128xf32, #tpu.memory_space<vmem>>, %arg9: memref<1x128xf32, #tpu.memory_space<vmem>>, %arg10: memref<128x64xf32, #tpu.memory_space<any>>, %arg11: memref<1x64xf32, #tpu.memory_space<vmem>>, %arg12: memref<1x64xf32, #tpu.memory_space<vmem>>, %arg13: memref<1x64xf32, #tpu.memory_space<any>>, %arg14: memref<1x1xf32, #tpu.memory_space<vmem>>, %arg15: memref<8x128xf32, #tpu.memory_space<vmem>>, %arg16: memref<512x256xf32, #tpu.memory_space<vmem>>, %arg17: memref<256x128xf32, #tpu.memory_space<vmem>>, %arg18: memref<128x64xf32, #tpu.memory_space<vmem>>, %arg19: memref<1x64xf32, #tpu.memory_space<vmem>>, %arg20: memref<4x!tpu.dma_semaphore, #tpu.memory_space<semaphore_mem>>) attributes {dimension_semantics = [], scalar_prefetch = 0 : i64, scratch_operands = 5 : i64, tpu.core_type = #tpu.core_type<tc>} {
    %c0_i32 = arith.constant 0 : i32
    %0 = tpu.memref_slice %arg20[%c0_i32] : memref<4x!tpu.dma_semaphore, #tpu.memory_space<semaphore_mem>> -> memref<1x!tpu.dma_semaphore, #tpu.memory_space<semaphore_mem>>
    %1 = tpu.memref_squeeze %0 : memref<1x!tpu.dma_semaphore, #tpu.memory_space<semaphore_mem>> -> memref<!tpu.dma_semaphore, #tpu.memory_space<semaphore_mem>>
    tpu.enqueue_dma source(%arg4 : memref<512x256xf32, #tpu.memory_space<any>>) target(%arg16 : memref<512x256xf32, #tpu.memory_space<vmem>>) target_semaphore(%1 : memref<!tpu.dma_semaphore, #tpu.memory_space<semaphore_mem>>)
    %c1_i32 = arith.constant 1 : i32
    %2 = tpu.memref_slice %arg20[%c1_i32] : memref<4x!tpu.dma_semaphore, #tpu.memory_space<semaphore_mem>> -> memref<1x!tpu.dma_semaphore, #tpu.memory_space<semaphore_mem>>
    %3 = tpu.memref_squeeze %2 : memref<1x!tpu.dma_semaphore, #tpu.memory_space<semaphore_mem>> -> memref<!tpu.dma_semaphore, #tpu.memory_space<semaphore_mem>>
    tpu.enqueue_dma source(%arg7 : memref<256x128xf32, #tpu.memory_space<any>>) target(%arg17 : memref<256x128xf32, #tpu.memory_space<vmem>>) target_semaphore(%3 : memref<!tpu.dma_semaphore, #tpu.memory_space<semaphore_mem>>)
    %c2_i32 = arith.constant 2 : i32
    %4 = tpu.memref_slice %arg20[%c2_i32] : memref<4x!tpu.dma_semaphore, #tpu.memory_space<semaphore_mem>> -> memref<1x!tpu.dma_semaphore, #tpu.memory_space<semaphore_mem>>
    %5 = tpu.memref_squeeze %4 : memref<1x!tpu.dma_semaphore, #tpu.memory_space<semaphore_mem>> -> memref<!tpu.dma_semaphore, #tpu.memory_space<semaphore_mem>>
    tpu.enqueue_dma source(%arg10 : memref<128x64xf32, #tpu.memory_space<any>>) target(%arg18 : memref<128x64xf32, #tpu.memory_space<vmem>>) target_semaphore(%5 : memref<!tpu.dma_semaphore, #tpu.memory_space<semaphore_mem>>)
    %c3_i32 = arith.constant 3 : i32
    %6 = tpu.memref_slice %arg20[%c3_i32] : memref<4x!tpu.dma_semaphore, #tpu.memory_space<semaphore_mem>> -> memref<1x!tpu.dma_semaphore, #tpu.memory_space<semaphore_mem>>
    %7 = tpu.memref_squeeze %6 : memref<1x!tpu.dma_semaphore, #tpu.memory_space<semaphore_mem>> -> memref<!tpu.dma_semaphore, #tpu.memory_space<semaphore_mem>>
    tpu.enqueue_dma source(%arg13 : memref<1x64xf32, #tpu.memory_space<any>>) target(%arg19 : memref<1x64xf32, #tpu.memory_space<vmem>>) target_semaphore(%7 : memref<!tpu.dma_semaphore, #tpu.memory_space<semaphore_mem>>)
    %c0 = arith.constant 0 : index
    %c0_0 = arith.constant 0 : index
    %8 = vector.load %arg0[%c0, %c0_0] : memref<8x128xf32, #tpu.memory_space<vmem>>, vector<8x128xf32>
    %c0_1 = arith.constant 0 : index
    %c0_2 = arith.constant 0 : index
    %9 = vector.load %arg1[%c0_1, %c0_2] : memref<128x512xf32, #tpu.memory_space<vmem>>, vector<128x512xf32>
    %cst = arith.constant dense<0.000000e+00> : vector<8x512xf32>
    %10 = tpu.matmul %8, %9, %cst {dimension_numbers = #tpu.dot_dimension_numbers<[1], [0], [0], [1], [0, 0, 1, 1], [], []>} : vector<8x128xf32>, vector<128x512xf32>, vector<8x512xf32> -> vector<8x512xf32>
    %cst_3 = arith.constant dense<0.000000e+00> : vector<512xf32>
    %11 = vector.multi_reduction <add>, %10, %cst_3 [0] : vector<8x512xf32> to vector<512xf32>
    %12 = vector.shape_cast %11 : vector<512xf32> to vector<1x512xf32>
    %13 = arith.mulf %10, %10 : vector<8x512xf32>
    %cst_4 = arith.constant dense<0.000000e+00> : vector<512xf32>
    %14 = vector.multi_reduction <add>, %13, %cst_4 [0] : vector<8x512xf32> to vector<512xf32>
    %15 = vector.shape_cast %14 : vector<512xf32> to vector<1x512xf32>
    %cst_5 = arith.constant 1.250000e-01 : f32
    %16 = vector.broadcast %cst_5 : f32 to vector<1x512xf32>
    %17 = arith.mulf %12, %16 : vector<1x512xf32>
    %cst_6 = arith.constant 1.250000e-01 : f32
    %18 = vector.broadcast %cst_6 : f32 to vector<1x512xf32>
    %19 = arith.mulf %15, %18 : vector<1x512xf32>
    %20 = arith.mulf %17, %17 : vector<1x512xf32>
    %21 = arith.subf %19, %20 : vector<1x512xf32>
    %cst_7 = arith.constant 0.000000e+00 : f32
    %22 = vector.broadcast %cst_7 : f32 to vector<1x512xf32>
    %23 = arith.maximumf %21, %22 : vector<1x512xf32>
    %c0_8 = arith.constant 0 : index
    %c0_9 = arith.constant 0 : index
    %24 = vector.load %arg2[%c0_8, %c0_9] : memref<1x512xf32, #tpu.memory_space<vmem>>, vector<1x512xf32>
    %cst_10 = arith.constant 9.99999974E-6 : f32
    %25 = vector.broadcast %cst_10 : f32 to vector<1x512xf32>
    %26 = arith.addf %23, %25 : vector<1x512xf32>
    %27 = math.rsqrt %26 : vector<1x512xf32>
    %28 = arith.mulf %24, %27 : vector<1x512xf32>
    %c0_11 = arith.constant 0 : index
    %c0_12 = arith.constant 0 : index
    %29 = vector.load %arg3[%c0_11, %c0_12] : memref<1x512xf32, #tpu.memory_space<vmem>>, vector<1x512xf32>
    %30 = arith.mulf %17, %28 : vector<1x512xf32>
    %31 = arith.subf %29, %30 : vector<1x512xf32>
    %32 = vector.broadcast %28 : vector<1x512xf32> to vector<8x512xf32>
    %33 = arith.mulf %10, %32 : vector<8x512xf32>
    %34 = vector.broadcast %31 : vector<1x512xf32> to vector<8x512xf32>
    %35 = arith.addf %33, %34 : vector<8x512xf32>
    %cst_13 = arith.constant 0.000000e+00 : f32
    %36 = vector.broadcast %cst_13 : f32 to vector<8x512xf32>
    %37 = arith.maximumf %35, %36 : vector<8x512xf32>
    %c0_i32_14 = arith.constant 0 : i32
    %38 = tpu.memref_slice %arg20[%c0_i32_14] : memref<4x!tpu.dma_semaphore, #tpu.memory_space<semaphore_mem>> -> memref<1x!tpu.dma_semaphore, #tpu.memory_space<semaphore_mem>>
    %39 = tpu.memref_squeeze %38 : memref<1x!tpu.dma_semaphore, #tpu.memory_space<semaphore_mem>> -> memref<!tpu.dma_semaphore, #tpu.memory_space<semaphore_mem>>
    tpu.wait_dma2 semaphore(%39 : memref<!tpu.dma_semaphore, #tpu.memory_space<semaphore_mem>>) src(%arg4 : memref<512x256xf32, #tpu.memory_space<any>>) dst(%arg16 : memref<512x256xf32, #tpu.memory_space<vmem>>)
    %c0_15 = arith.constant 0 : index
    %c0_16 = arith.constant 0 : index
    %40 = vector.load %arg16[%c0_15, %c0_16] : memref<512x256xf32, #tpu.memory_space<vmem>>, vector<512x256xf32>
    %cst_17 = arith.constant dense<0.000000e+00> : vector<8x256xf32>
    %41 = tpu.matmul %37, %40, %cst_17 {dimension_numbers = #tpu.dot_dimension_numbers<[1], [0], [0], [1], [0, 0, 1, 1], [], []>} : vector<8x512xf32>, vector<512x256xf32>, vector<8x256xf32> -> vector<8x256xf32>
    %cst_18 = arith.constant dense<0.000000e+00> : vector<256xf32>
    %42 = vector.multi_reduction <add>, %41, %cst_18 [0] : vector<8x256xf32> to vector<256xf32>
    %43 = vector.shape_cast %42 : vector<256xf32> to vector<1x256xf32>
    %44 = arith.mulf %41, %41 : vector<8x256xf32>
    %cst_19 = arith.constant dense<0.000000e+00> : vector<256xf32>
    %45 = vector.multi_reduction <add>, %44, %cst_19 [0] : vector<8x256xf32> to vector<256xf32>
    %46 = vector.shape_cast %45 : vector<256xf32> to vector<1x256xf32>
    %cst_20 = arith.constant 1.250000e-01 : f32
    %47 = vector.broadcast %cst_20 : f32 to vector<1x256xf32>
    %48 = arith.mulf %43, %47 : vector<1x256xf32>
    %cst_21 = arith.constant 1.250000e-01 : f32
    %49 = vector.broadcast %cst_21 : f32 to vector<1x256xf32>
    %50 = arith.mulf %46, %49 : vector<1x256xf32>
    %51 = arith.mulf %48, %48 : vector<1x256xf32>
    %52 = arith.subf %50, %51 : vector<1x256xf32>
    %cst_22 = arith.constant 0.000000e+00 : f32
    %53 = vector.broadcast %cst_22 : f32 to vector<1x256xf32>
    %54 = arith.maximumf %52, %53 : vector<1x256xf32>
    %c0_23 = arith.constant 0 : index
    %c0_24 = arith.constant 0 : index
    %55 = vector.load %arg5[%c0_23, %c0_24] : memref<1x256xf32, #tpu.memory_space<vmem>>, vector<1x256xf32>
    %cst_25 = arith.constant 9.99999974E-6 : f32
    %56 = vector.broadcast %cst_25 : f32 to vector<1x256xf32>
    %57 = arith.addf %54, %56 : vector<1x256xf32>
    %58 = math.rsqrt %57 : vector<1x256xf32>
    %59 = arith.mulf %55, %58 : vector<1x256xf32>
    %c0_26 = arith.constant 0 : index
    %c0_27 = arith.constant 0 : index
    %60 = vector.load %arg6[%c0_26, %c0_27] : memref<1x256xf32, #tpu.memory_space<vmem>>, vector<1x256xf32>
    %61 = arith.mulf %48, %59 : vector<1x256xf32>
    %62 = arith.subf %60, %61 : vector<1x256xf32>
    %63 = vector.broadcast %59 : vector<1x256xf32> to vector<8x256xf32>
    %64 = arith.mulf %41, %63 : vector<8x256xf32>
    %65 = vector.broadcast %62 : vector<1x256xf32> to vector<8x256xf32>
    %66 = arith.addf %64, %65 : vector<8x256xf32>
    %cst_28 = arith.constant 0.000000e+00 : f32
    %67 = vector.broadcast %cst_28 : f32 to vector<8x256xf32>
    %68 = arith.maximumf %66, %67 : vector<8x256xf32>
    %c1_i32_29 = arith.constant 1 : i32
    %69 = tpu.memref_slice %arg20[%c1_i32_29] : memref<4x!tpu.dma_semaphore, #tpu.memory_space<semaphore_mem>> -> memref<1x!tpu.dma_semaphore, #tpu.memory_space<semaphore_mem>>
    %70 = tpu.memref_squeeze %69 : memref<1x!tpu.dma_semaphore, #tpu.memory_space<semaphore_mem>> -> memref<!tpu.dma_semaphore, #tpu.memory_space<semaphore_mem>>
    tpu.wait_dma2 semaphore(%70 : memref<!tpu.dma_semaphore, #tpu.memory_space<semaphore_mem>>) src(%arg7 : memref<256x128xf32, #tpu.memory_space<any>>) dst(%arg17 : memref<256x128xf32, #tpu.memory_space<vmem>>)
    %c0_30 = arith.constant 0 : index
    %c0_31 = arith.constant 0 : index
    %71 = vector.load %arg17[%c0_30, %c0_31] : memref<256x128xf32, #tpu.memory_space<vmem>>, vector<256x128xf32>
    %cst_32 = arith.constant dense<0.000000e+00> : vector<8x128xf32>
    %72 = tpu.matmul %68, %71, %cst_32 {dimension_numbers = #tpu.dot_dimension_numbers<[1], [0], [0], [1], [0, 0, 1, 1], [], []>} : vector<8x256xf32>, vector<256x128xf32>, vector<8x128xf32> -> vector<8x128xf32>
    %cst_33 = arith.constant dense<0.000000e+00> : vector<128xf32>
    %73 = vector.multi_reduction <add>, %72, %cst_33 [0] : vector<8x128xf32> to vector<128xf32>
    %74 = vector.shape_cast %73 : vector<128xf32> to vector<1x128xf32>
    %75 = arith.mulf %72, %72 : vector<8x128xf32>
    %cst_34 = arith.constant dense<0.000000e+00> : vector<128xf32>
    %76 = vector.multi_reduction <add>, %75, %cst_34 [0] : vector<8x128xf32> to vector<128xf32>
    %77 = vector.shape_cast %76 : vector<128xf32> to vector<1x128xf32>
    %cst_35 = arith.constant 1.250000e-01 : f32
    %78 = vector.broadcast %cst_35 : f32 to vector<1x128xf32>
    %79 = arith.mulf %74, %78 : vector<1x128xf32>
    %cst_36 = arith.constant 1.250000e-01 : f32
    %80 = vector.broadcast %cst_36 : f32 to vector<1x128xf32>
    %81 = arith.mulf %77, %80 : vector<1x128xf32>
    %82 = arith.mulf %79, %79 : vector<1x128xf32>
    %83 = arith.subf %81, %82 : vector<1x128xf32>
    %cst_37 = arith.constant 0.000000e+00 : f32
    %84 = vector.broadcast %cst_37 : f32 to vector<1x128xf32>
    %85 = arith.maximumf %83, %84 : vector<1x128xf32>
    %c0_38 = arith.constant 0 : index
    %c0_39 = arith.constant 0 : index
    %86 = vector.load %arg8[%c0_38, %c0_39] : memref<1x128xf32, #tpu.memory_space<vmem>>, vector<1x128xf32>
    %cst_40 = arith.constant 9.99999974E-6 : f32
    %87 = vector.broadcast %cst_40 : f32 to vector<1x128xf32>
    %88 = arith.addf %85, %87 : vector<1x128xf32>
    %89 = math.rsqrt %88 : vector<1x128xf32>
    %90 = arith.mulf %86, %89 : vector<1x128xf32>
    %c0_41 = arith.constant 0 : index
    %c0_42 = arith.constant 0 : index
    %91 = vector.load %arg9[%c0_41, %c0_42] : memref<1x128xf32, #tpu.memory_space<vmem>>, vector<1x128xf32>
    %92 = arith.mulf %79, %90 : vector<1x128xf32>
    %93 = arith.subf %91, %92 : vector<1x128xf32>
    %94 = vector.broadcast %90 : vector<1x128xf32> to vector<8x128xf32>
    %95 = arith.mulf %72, %94 : vector<8x128xf32>
    %96 = vector.broadcast %93 : vector<1x128xf32> to vector<8x128xf32>
    %97 = arith.addf %95, %96 : vector<8x128xf32>
    %cst_43 = arith.constant 0.000000e+00 : f32
    %98 = vector.broadcast %cst_43 : f32 to vector<8x128xf32>
    %99 = arith.maximumf %97, %98 : vector<8x128xf32>
    %c2_i32_44 = arith.constant 2 : i32
    %100 = tpu.memref_slice %arg20[%c2_i32_44] : memref<4x!tpu.dma_semaphore, #tpu.memory_space<semaphore_mem>> -> memref<1x!tpu.dma_semaphore, #tpu.memory_space<semaphore_mem>>
    %101 = tpu.memref_squeeze %100 : memref<1x!tpu.dma_semaphore, #tpu.memory_space<semaphore_mem>> -> memref<!tpu.dma_semaphore, #tpu.memory_space<semaphore_mem>>
    tpu.wait_dma2 semaphore(%101 : memref<!tpu.dma_semaphore, #tpu.memory_space<semaphore_mem>>) src(%arg10 : memref<128x64xf32, #tpu.memory_space<any>>) dst(%arg18 : memref<128x64xf32, #tpu.memory_space<vmem>>)
    %c0_45 = arith.constant 0 : index
    %c0_46 = arith.constant 0 : index
    %102 = vector.load %arg18[%c0_45, %c0_46] : memref<128x64xf32, #tpu.memory_space<vmem>>, vector<128x64xf32>
    %cst_47 = arith.constant dense<0.000000e+00> : vector<8x64xf32>
    %103 = tpu.matmul %99, %102, %cst_47 {dimension_numbers = #tpu.dot_dimension_numbers<[1], [0], [0], [1], [0, 0, 1, 1], [], []>} : vector<8x128xf32>, vector<128x64xf32>, vector<8x64xf32> -> vector<8x64xf32>
    %cst_48 = arith.constant dense<0.000000e+00> : vector<64xf32>
    %104 = vector.multi_reduction <add>, %103, %cst_48 [0] : vector<8x64xf32> to vector<64xf32>
    %105 = vector.shape_cast %104 : vector<64xf32> to vector<1x64xf32>
    %106 = arith.mulf %103, %103 : vector<8x64xf32>
    %cst_49 = arith.constant dense<0.000000e+00> : vector<64xf32>
    %107 = vector.multi_reduction <add>, %106, %cst_49 [0] : vector<8x64xf32> to vector<64xf32>
    %108 = vector.shape_cast %107 : vector<64xf32> to vector<1x64xf32>
    %cst_50 = arith.constant 1.250000e-01 : f32
    %109 = vector.broadcast %cst_50 : f32 to vector<1x64xf32>
    %110 = arith.mulf %105, %109 : vector<1x64xf32>
    %cst_51 = arith.constant 1.250000e-01 : f32
    %111 = vector.broadcast %cst_51 : f32 to vector<1x64xf32>
    %112 = arith.mulf %108, %111 : vector<1x64xf32>
    %113 = arith.mulf %110, %110 : vector<1x64xf32>
    %114 = arith.subf %112, %113 : vector<1x64xf32>
    %cst_52 = arith.constant 0.000000e+00 : f32
    %115 = vector.broadcast %cst_52 : f32 to vector<1x64xf32>
    %116 = arith.maximumf %114, %115 : vector<1x64xf32>
    %c0_53 = arith.constant 0 : index
    %c0_54 = arith.constant 0 : index
    %117 = vector.load %arg11[%c0_53, %c0_54] : memref<1x64xf32, #tpu.memory_space<vmem>>, vector<1x64xf32>
    %cst_55 = arith.constant 9.99999974E-6 : f32
    %118 = vector.broadcast %cst_55 : f32 to vector<1x64xf32>
    %119 = arith.addf %116, %118 : vector<1x64xf32>
    %120 = math.rsqrt %119 : vector<1x64xf32>
    %121 = arith.mulf %117, %120 : vector<1x64xf32>
    %c0_56 = arith.constant 0 : index
    %c0_57 = arith.constant 0 : index
    %122 = vector.load %arg12[%c0_56, %c0_57] : memref<1x64xf32, #tpu.memory_space<vmem>>, vector<1x64xf32>
    %123 = arith.mulf %110, %121 : vector<1x64xf32>
    %124 = arith.subf %122, %123 : vector<1x64xf32>
    %125 = vector.broadcast %121 : vector<1x64xf32> to vector<8x64xf32>
    %126 = arith.mulf %103, %125 : vector<8x64xf32>
    %127 = vector.broadcast %124 : vector<1x64xf32> to vector<8x64xf32>
    %128 = arith.addf %126, %127 : vector<8x64xf32>
    %cst_58 = arith.constant 0.000000e+00 : f32
    %129 = vector.broadcast %cst_58 : f32 to vector<8x64xf32>
    %130 = arith.maximumf %128, %129 : vector<8x64xf32>
    %c3_i32_59 = arith.constant 3 : i32
    %131 = tpu.memref_slice %arg20[%c3_i32_59] : memref<4x!tpu.dma_semaphore, #tpu.memory_space<semaphore_mem>> -> memref<1x!tpu.dma_semaphore, #tpu.memory_space<semaphore_mem>>
    %132 = tpu.memref_squeeze %131 : memref<1x!tpu.dma_semaphore, #tpu.memory_space<semaphore_mem>> -> memref<!tpu.dma_semaphore, #tpu.memory_space<semaphore_mem>>
    tpu.wait_dma2 semaphore(%132 : memref<!tpu.dma_semaphore, #tpu.memory_space<semaphore_mem>>) src(%arg13 : memref<1x64xf32, #tpu.memory_space<any>>) dst(%arg19 : memref<1x64xf32, #tpu.memory_space<vmem>>)
    %c0_60 = arith.constant 0 : index
    %c0_61 = arith.constant 0 : index
    %133 = vector.load %arg19[%c0_60, %c0_61] : memref<1x64xf32, #tpu.memory_space<vmem>>, vector<1x64xf32>
    %134 = vector.broadcast %133 : vector<1x64xf32> to vector<8x64xf32>
    %135 = arith.mulf %130, %134 : vector<8x64xf32>
    %cst_62 = arith.constant dense<0.000000e+00> : vector<8xf32>
    %136 = vector.multi_reduction <add>, %135, %cst_62 [1] : vector<8x64xf32> to vector<8xf32>
    %137 = vector.shape_cast %136 : vector<8xf32> to vector<8x1xf32>
    %c0_63 = arith.constant 0 : index
    %c0_64 = arith.constant 0 : index
    %138 = vector.load %arg14[%c0_63, %c0_64] : memref<1x1xf32, #tpu.memory_space<vmem>>, vector<1x1xf32>
    %139 = vector.broadcast %138 : vector<1x1xf32> to vector<8x1xf32>
    %140 = arith.addf %137, %139 : vector<8x1xf32>
    %141 = vector.shape_cast %140 : vector<8x1xf32> to vector<8x1xf32>
    %142 = vector.broadcast %141 : vector<8x1xf32> to vector<8x128xf32>
    %c0_65 = arith.constant 0 : index
    %c0_66 = arith.constant 0 : index
    %143 = vector.load %arg15[%c0_65, %c0_66] : memref<8x128xf32, #tpu.memory_space<vmem>>, vector<8x128xf32>
    tpu.vector_store %arg15[%c0_65, %c0_66], %142 {strides = array<i32>} : memref<8x128xf32, #tpu.memory_space<vmem>>, vector<8x128xf32>,
    return
  }
}

</mosaic_0001>

<bundles_post_ra>
// kernel: timestamp_prediction_forward.1
= control target key start
LH: loop header
LB: loop body
LE: loop exit
PB: predicated region body
PF: predicated region fallthrough
CT: control target
= control target key end

     0   :  { %s2141_s0 = inlined_call_operand.vmem [shape: f32[8,128], index: 0, kind: input, shape index: {}]   ;;  %s2142_s1 = inlined_call_operand.hbm [shape: f32[128,512], index: 1, kind: input, shape index: {}]   ;;  %s2143_s2 = inlined_call_operand.vmem [shape: f32[1,512], index: 2, kind: input, shape index: {}]   ;;  %s2144_s3 = inlined_call_operand.vmem [shape: f32[1,512], index: 3, kind: input, shape index: {}]   ;;  %s2145_s4 = inlined_call_operand.hbm [shape: f32[512,256], index: 4, kind: input, shape index: {}]   ;;  %s2146_s5 = inlined_call_operand.vmem [shape: f32[1,256], index: 5, kind: input, shape index: {}]   ;;  %s2147_s6 = inlined_call_operand.vmem [shape: f32[1,256], index: 6, kind: input, shape index: {}]   ;;  %s2148_s7 = inlined_call_operand.hbm [shape: f32[256,128], index: 7, kind: input, shape index: {}]   ;;  %s2149_s8 = inlined_call_operand.vmem [shape: f32[1,128], index: 8, kind: input, shape index: {}]   ;;  %s2150_s9 = inlined_call_operand.vmem [shape: f32[1,128], index: 9, kind: input, shape index: {}]   ;;  %s2151_s10 = inlined_call_operand.vmem [shape: f32[128,64], index: 10, kind: input, shape index: {}]   ;;  %s2152_s11 = inlined_call_operand.vmem [shape: f32[1,64], index: 11, kind: input, shape index: {}]   ;;  %s2153_s12 = inlined_call_operand.vmem [shape: f32[1,64], index: 12, kind: input, shape index: {}]   ;;  %s2154_s13 = inlined_call_operand.vmem [shape: f32[1,64], index: 13, kind: input, shape index: {}]   ;;  %s2155_s14 = inlined_call_operand.<no memory space> [shape: f32[1,1], index: 14, kind: input, shape index: {}]   ;;  %s2156_s15 = inlined_call_operand.vmem [shape: f32[8,128], index: 15, kind: output, shape index: {}]  }
   0x1   :  { %v20_v0 = vstv %s2155_s14 }
   0x2   :  { %21 = vst [vmem:[#allocation7] sm:$0x1] %v20_v0 }
   0x3   :  { %22 = vsyncpa [#allocation9], 0  ;;  %s1791_s20 = smov [#allocation8]   ;;  %s1715_s24 = scalar_lea.hbm %s2142_s1, 8192 }
   0x4   :  { %s30_s21 = sshll.u32 %s1791_s20, 4  ;;  %p1716_p0 = scmp.ne.s32.totalorder %s2142_s1, %s1715_s24  ;;  %s31_s21 = int_to_ptr.vmem [resolvable:$true] %s30_s21 }
   0x5   :  { %p1719_p1 = scmp.lt.u32.totalorder %s1715_s24, %s2142_s1 }
   0x7   :  { %p1721_p2 = pnand %p1719_p1, %p1716_p0 }
   0x9   :  { %1724 = shalt.err (!%p1721_p2)
}
   0xa   :  { %s1725_s14 = scalar_lea.vmem %s31_s21, 8192  ;;  %p1730_p4 = scmp.lt.s32.totalorder %s31_s21, %s31_s21 }
   0xb   :  { %p1726_p3 = scmp.ne.s32.totalorder %s31_s21, %s1725_s14  ;;  %p1731_p5 = scmp.lt.s32.totalorder %s1725_s14, %s1725_s14 }
   0xd   :  { %p1732_p6 = por %p1731_p5, %p1730_p4 }
   0xf   :  { %p1733_p7 = pnand %p1732_p6, %p1726_p3 }
  0x11   :  { %1736 = shalt.err (!%p1733_p7)
}
  0x12   :  { %s1792_s29 = smov 512   ;;  %s1793_s30 = smov 32  }
  0x13   :  { %36 = dma.hbm_to_vmem [thread:$0]  %s2142_s1, 8192, %s31_s21, [#allocation9], %s1792_s29, %s1792_s29, %s1793_s30  }
  0x14   :  { %1781 = dma.done.wait [#allocation9], 8192  }
  0x15   :  { %1782 = vsyncadd [#allocation9], 4294959104  ;;  %s1794_s18 = smov [#allocation2]   ;;  %s1795_s20 = smov [#allocation3]  }
  0x16   :  { %s65_s19 = sshll.u32 %s1794_s18, 4  ;;  %s77_s22 = sshll.u32 %s1795_s20, 4  ;;  %s66_s19 = int_to_ptr.vmem [resolvable:$true] %s65_s19  ;;  %s78_s22 = int_to_ptr.vmem [resolvable:$true] %s77_s22 }
  0x17   :  { %s1737_s25 = scalar_lea.hbm %s2145_s4, 16384 }
  0x18   :  { %p1738_p8 = scmp.ne.s32.totalorder %s2145_s4, %s1737_s25  ;;  %p1741_p9 = scmp.lt.u32.totalorder %s1737_s25, %s2145_s4 }
  0x1a   :  { %p1743_p10 = pnand %p1741_p9, %p1738_p8 }
  0x1c   :  { %1746 = shalt.err (!%p1743_p10)  }
  0x1d   :  { %s1747_s1 = scalar_lea.vmem %s66_s19, 16384  ;;  %p1752_p12 = scmp.lt.s32.totalorder %s66_s19, %s66_s19 }
  0x1e   :  { %p1748_p11 = scmp.ne.s32.totalorder %s66_s19, %s1747_s1  ;;  %p1753_p13 = scmp.lt.s32.totalorder %s1747_s1, %s1747_s1 }
  0x20   :  { %p1754_p0 = por %p1753_p13, %p1752_p12 }
  0x22   :  { %p1755_p1 = pnand %p1754_p0, %p1748_p11 }
  0x24   :  { %1758 = shalt.err (!%p1755_p1)  }
  0x25   :  { %68 = dma.hbm_to_vmem [thread:$0]  %s2145_s4, 16384, %s66_s19, [#allocation6] }
  0x26   :  { %s1759_s17 = scalar_lea.hbm %s2148_s7, 4096 }
  0x27   :  { %p1760_p2 = scmp.ne.s32.totalorder %s2148_s7, %s1759_s17  ;;  %p1763_p3 = scmp.lt.u32.totalorder %s1759_s17, %s2148_s7 }
  0x29   :  { %p1765_p4 = pnand %p1763_p3, %p1760_p2 }
  0x2b   :  { %1768 = shalt.err (!%p1765_p4)  }
  0x2c   :  { %s1769_s25 = scalar_lea.vmem %s78_s22, 4096  ;;  %p1774_p6 = scmp.lt.s32.totalorder %s78_s22, %s78_s22 }
  0x2d   :  { %p1770_p5 = scmp.ne.s32.totalorder %s78_s22, %s1769_s25  ;;  %p1775_p7 = scmp.lt.s32.totalorder %s1769_s25, %s1769_s25 }
  0x2f   :  { %p1776_p8 = por %p1775_p7, %p1774_p6 }
  0x31   :  { %p1777_p9 = pnand %p1776_p8, %p1770_p5 }
  0x33   :  { %1780 = shalt.err (!%p1777_p9)  }
  0x34   :  { %80 = dma.hbm_to_vmem [thread:$0]  %s2148_s7, 4096, %s78_s22, [#allocation6 + $0x1]  ;;  %v1923_v1 = vld [vmem:[%s2151_s10] sm:$0xff]  ;;  %v1928_v2 = vld [vmem:[%s2151_s10 + $0x8] sm:$0xff]  ;;  %v1933_v3 = vld [vmem:[%s2151_s10 + $0x10] sm:$0xff] }
  0x35   :  { %v1938_v4 = vld [vmem:[%s2151_s10 + $0x18] sm:$0xff]  ;;  %v1943_v5 = vld [vmem:[%s2151_s10 + $0x20] sm:$0xff]  ;;  %v1948_v6 = vld [vmem:[%s2151_s10 + $0x28] sm:$0xff] }
  0x36   :  { %v1953_v7 = vld [vmem:[%s2151_s10 + $0x30] sm:$0xff]  ;;  %v1958_v8 = vld [vmem:[%s2151_s10 + $0x38] sm:$0xff]  ;;  %v1963_v9 = vld [vmem:[%s2151_s10 + $0x40] sm:$0xff] }
  0x37   :  { %v1968_v10 = vld [vmem:[%s2151_s10 + $0x48] sm:$0xff]  ;;  %v1973_v11 = vld [vmem:[%s2151_s10 + $0x50] sm:$0xff]  ;;  %v1978_v12 = vld [vmem:[%s2151_s10 + $0x58] sm:$0xff] }
  0x38   :  { %v1983_v13 = vld [vmem:[%s2151_s10 + $0x60] sm:$0xff]  ;;  %v1988_v14 = vld [vmem:[%s2151_s10 + $0x68] sm:$0xff]  ;;  %v1993_v15 = vld [vmem:[%s2151_s10 + $0x70] sm:$0xff] }
  0x39   :  { %v1998_v16 = vld [vmem:[%s2151_s10 + $0x78] sm:$0xff] }
  0x3a   :  { %153 = vsyncadd [#allocation6 + $0x2], 2048  ;;  %v172_v17 = vld [vmem:[%s2154_s13] sm:$0x1] }
  0x3b   :  { %173 = vst [vmem:[#allocation5] sm:$0x1] %v172_v17 }
  0x3c   :  { %198 = vsyncadd [#allocation6 + $0x3], 16  ;;  %v201_v18 = vld [vmem:[#allocation8 + $0x8] sm:$0xff]  ;;  %v200_v21 = vld [vmem:[#allocation8] sm:$0xff]  ;;  %v1796_v24 = vmov 0.0  }
  0x3d   :  { %v205_v19 = vld [vmem:[#allocation8 + $0x28] sm:$0xff]  ;;  %v204_v22 = vld [vmem:[#allocation8 + $0x20] sm:$0xff]  ;;  %328 = vmatprep.mubr.f32.mxu1 %v1796_v24 }
  0x3e   :  { %v1438_v20 = vpack.c.bf16 %v205_v19, %v201_v18  ;;  %v209_v23 = vld [vmem:[#allocation8 + $0x48] sm:$0xff]  ;;  %v1440_v25 = vpack.c.bf16 %v204_v22, %v200_v21  ;;  %v208_v27 = vld [vmem:[#allocation8 + $0x40] sm:$0xff]  ;;  %v203_v18 = vld [vmem:[#allocation8 + $0x18] sm:$0xff] }
  0x3f   :  { %v213_v26 = vld [vmem:[#allocation8 + $0x68] sm:$0xff]  ;;  %v212_v28 = vld [vmem:[#allocation8 + $0x60] sm:$0xff]  ;;  %v207_v19 = vld [vmem:[#allocation8 + $0x38] sm:$0xff] }
  0x40   :  { %1439 = vmatprep.subr.bf16.mxu1 %v1438_v20  ;;  %v1442_v29 = vpack.c.bf16 %v213_v26, %v209_v23  ;;  %v217_v30 = vld [vmem:[#allocation8 + $0x88] sm:$0xff]  ;;  %v1444_v32 = vpack.c.bf16 %v212_v28, %v208_v27  ;;  %v216_v34 = vld [vmem:[#allocation8 + $0x80] sm:$0xff]  ;;  %v1470_v21 = vpack.c.bf16 %v207_v19, %v203_v18  ;;  %v202_v22 = vld [vmem:[#allocation8 + $0x10] sm:$0xff] }
  0x41   :  { %v221_v31 = vld [vmem:[#allocation8 + $0xa8] sm:$0xff]  ;;  %1441 = vmatpush1.bf16.msra.mxu1 %v1440_v25  ;;  %v220_v35 = vld [vmem:[#allocation8 + $0xa0] sm:$0xff]  ;;  %v206_v23 = vld [vmem:[#allocation8 + $0x30] sm:$0xff] }
  0x42   :  { %1443 = vmatprep.subr.bf16.mxu1 %v1442_v29  ;;  %v1446_v33 = vpack.c.bf16 %v221_v31, %v217_v30  ;;  %v225_v36 = vld [vmem:[#allocation8 + $0xc8] sm:$0xff]  ;;  %v1448_v38 = vpack.c.bf16 %v220_v35, %v216_v34  ;;  %v224_v40 = vld [vmem:[#allocation8 + $0xc0] sm:$0xff]  ;;  %v211_v25 = vld [vmem:[#allocation8 + $0x58] sm:$0xff]  ;;  %v1472_v28 = vpack.c.bf16 %v206_v23, %v202_v22 }
  0x43   :  { %v229_v37 = vld [vmem:[#allocation8 + $0xe8] sm:$0xff]  ;;  %v228_v41 = vld [vmem:[#allocation8 + $0xe0] sm:$0xff]  ;;  %v215_v26 = vld [vmem:[#allocation8 + $0x78] sm:$0xff] }
  0x44   :  { %v1450_v39 = vpack.c.bf16 %v229_v37, %v225_v36  ;;  %v233_v42 = vld [vmem:[#allocation8 + $0x108] sm:$0xff]  ;;  %v1452_v44 = vpack.c.bf16 %v228_v41, %v224_v40  ;;  %v232_v46 = vld [vmem:[#allocation8 + $0x100] sm:$0xff]  ;;  %v1474_v29 = vpack.c.bf16 %v215_v26, %v211_v25  ;;  %v210_v30 = vld [vmem:[#allocation8 + $0x50] sm:$0xff] }
  0x45   :  { %1445 = vmatpush1.bf16.msra.mxu1 %v1444_v32  ;;  %v237_v43 = vld [vmem:[#allocation8 + $0x128] sm:$0xff]  ;;  %v236_v47 = vld [vmem:[#allocation8 + $0x120] sm:$0xff]  ;;  %v214_v31 = vld [vmem:[#allocation8 + $0x70] sm:$0xff] }
  0x46   :  { %1447 = vmatprep.subr.bf16.mxu1 %v1446_v33  ;;  %v1454_v45 = vpack.c.bf16 %v237_v43, %v233_v42  ;;  %v241_v48 = vld [vmem:[#allocation8 + $0x148] sm:$0xff]  ;;  %v1456_v50 = vpack.c.bf16 %v236_v47, %v232_v46  ;;  %v240_v52 = vld [vmem:[#allocation8 + $0x140] sm:$0xff]  ;;  %v219_v32 = vld [vmem:[#allocation8 + $0x98] sm:$0xff]  ;;  %v1476_v34 = vpack.c.bf16 %v214_v31, %v210_v30 }
  0x47   :  { %v245_v49 = vld [vmem:[#allocation8 + $0x168] sm:$0xff]  ;;  %v244_v53 = vld [vmem:[#allocation8 + $0x160] sm:$0xff]  ;;  %v223_v33 = vld [vmem:[#allocation8 + $0xb8] sm:$0xff] }
  0x48   :  { %v1458_v51 = vpack.c.bf16 %v245_v49, %v241_v48  ;;  %v249_v54 = vld [vmem:[#allocation8 + $0x188] sm:$0xff]  ;;  %v1460_v56 = vpack.c.bf16 %v244_v53, %v240_v52  ;;  %v248_v58 = vld [vmem:[#allocation8 + $0x180] sm:$0xff]  ;;  %v1478_v35 = vpack.c.bf16 %v223_v33, %v219_v32  ;;  %v218_v36 = vld [vmem:[#allocation8 + $0x90] sm:$0xff] }
  0x49   :  { %1449 = vmatpush1.bf16.msra.mxu1 %v1448_v38  ;;  %v253_v55 = vld [vmem:[#allocation8 + $0x1a8] sm:$0xff]  ;;  %v252_v59 = vld [vmem:[#allocation8 + $0x1a0] sm:$0xff]  ;;  %v222_v37 = vld [vmem:[#allocation8 + $0xb0] sm:$0xff] }
  0x4a   :  { %1451 = vmatprep.subr.bf16.mxu1 %v1450_v39  ;;  %v1462_v57 = vpack.c.bf16 %v253_v55, %v249_v54  ;;  %v257_v60 = vld [vmem:[#allocation8 + $0x1c8] sm:$0xff]  ;;  %v1464_v62 = vpack.c.bf16 %v252_v59, %v248_v58  ;;  %v256_v0 = vld [vmem:[#allocation8 + $0x1c0] sm:$0xff]  ;;  %v227_v38 = vld [vmem:[#allocation8 + $0xd8] sm:$0xff]  ;;  %v1480_v40 = vpack.c.bf16 %v222_v37, %v218_v36 }
  0x4b   :  { %v261_v61 = vld [vmem:[#allocation8 + $0x1e8] sm:$0xff]  ;;  %v260_v17 = vld [vmem:[#allocation8 + $0x1e0] sm:$0xff]  ;;  %v231_v39 = vld [vmem:[#allocation8 + $0xf8] sm:$0xff] }
  0x4c   :  { %v1466_v63 = vpack.c.bf16 %v261_v61, %v257_v60  ;;  %v1468_v20 = vpack.c.bf16 %v260_v17, %v256_v0  ;;  %v199_v27 = vld [vmem:[%s2141_s0] sm:$0xff]  ;;  %v1482_v41 = vpack.c.bf16 %v231_v39, %v227_v38  ;;  %v226_v42 = vld [vmem:[#allocation8 + $0xd0] sm:$0xff] }
  0x4d   :  { %1453 = vmatpush1.bf16.msra.mxu1 %v1452_v44  ;;  %v230_v43 = vld [vmem:[#allocation8 + $0xf0] sm:$0xff]  ;;  %v235_v44 = vld [vmem:[#allocation8 + $0x118] sm:$0xff] }
  0x4e   :  { %1455 = vmatprep.subr.bf16.mxu1 %v1454_v45  ;;  %v239_v45 = vld [vmem:[#allocation8 + $0x138] sm:$0xff]  ;;  %v1484_v46 = vpack.c.bf16 %v230_v43, %v226_v42  ;;  %v234_v48 = vld [vmem:[#allocation8 + $0x110] sm:$0xff] }
  0x4f   :  { %v1486_v47 = vpack.c.bf16 %v239_v45, %v235_v44  ;;  %v238_v49 = vld [vmem:[#allocation8 + $0x130] sm:$0xff] }
  0x50   :  { %v1488_v52 = vpack.c.bf16 %v238_v49, %v234_v48  ;;  %v242_v54 = vld [vmem:[#allocation8 + $0x150] sm:$0xff] }
  0x51   :  { %1457 = vmatpush1.bf16.msra.mxu1 %v1456_v50  ;;  %v243_v50 = vld [vmem:[#allocation8 + $0x158] sm:$0xff]  ;;  %v246_v55 = vld [vmem:[#allocation8 + $0x170] sm:$0xff] }
  0x52   :  { %1459 = vmatprep.subr.bf16.mxu1 %v1458_v51  ;;  %v247_v51 = vld [vmem:[#allocation8 + $0x178] sm:$0xff]  ;;  %v1492_v58 = vpack.c.bf16 %v246_v55, %v242_v54  ;;  %v250_v60 = vld [vmem:[#allocation8 + $0x190] sm:$0xff] }
  0x53   :  { %v1490_v53 = vpack.c.bf16 %v247_v51, %v243_v50  ;;  %v254_v61 = vld [vmem:[#allocation8 + $0x1b0] sm:$0xff] }
  0x54   :  { %v1496_v0 = vpack.c.bf16 %v254_v61, %v250_v60  ;;  %v258_v18 = vld [vmem:[#allocation8 + $0x1d0] sm:$0xff] }
  0x55   :  { %1461 = vmatpush1.bf16.msra.mxu1 %v1460_v56  ;;  %v251_v56 = vld [vmem:[#allocation8 + $0x198] sm:$0xff]  ;;  %v262_v19 = vld [vmem:[#allocation8 + $0x1f0] sm:$0xff] }
  0x56   :  { %1463 = vmatprep.subr.bf16.mxu1 %v1462_v57  ;;  %v255_v57 = vld [vmem:[#allocation8 + $0x1b8] sm:$0xff] }
  0x57   :  { %v1494_v59 = vpack.c.bf16 %v255_v57, %v251_v56 }
  0x59   :  { %1465 = vmatpush1.bf16.msra.mxu1 %v1464_v62  ;;  %v259_v62 = vld [vmem:[#allocation8 + $0x1d8] sm:$0xff] }
  0x5a   :  { %1467 = vmatprep.subr.bf16.mxu1 %v1466_v63  ;;  %v263_v63 = vld [vmem:[#allocation8 + $0x1f8] sm:$0xff] }
  0x5b   :  { %v1498_v17 = vpack.c.bf16 %v263_v63, %v259_v62 }
  0x5d   :  { %1469 = vmatpush1.bf16.msra.mxu1 %v1468_v20  ;;  %v1500_v20 = vpack.c.bf16 %v262_v19, %v258_v18 }
  0x5e   :  { %1471 = vmatprep.subr.bf16.mxu1 %v1470_v21 }
  0x60   :  { %329 = vmatmul.mubr.f32.vlgmr.msra.gmra.mrb[0].mxu1 %v199_v27 }
  0x61   :  { %1473 = vmatpush1.bf16.msra.mxu1 %v1472_v28  ;;  %399 = vmatprep.mubr.f32.mxu1 %v1796_v24 }
  0x62   :  { %1475 = vmatprep.subr.bf16.mxu1 %v1474_v29 }
  0x65   :  { %1477 = vmatpush1.bf16.msra.mxu1 %v1476_v34 }
  0x66   :  { %1479 = vmatprep.subr.bf16.mxu1 %v1478_v35 }
  0x69   :  { %1481 = vmatpush1.bf16.msra.mxu1 %v1480_v40 }
  0x6a   :  { %1483 = vmatprep.subr.bf16.mxu1 %v1482_v41 }
  0x6d   :  { %1485 = vmatpush1.bf16.msra.mxu1 %v1484_v46 }
  0x6e   :  { %1487 = vmatprep.subr.bf16.mxu1 %v1486_v47 }
  0x71   :  { %1489 = vmatpush1.bf16.msra.mxu1 %v1488_v52 }
  0x72   :  { %1491 = vmatprep.subr.bf16.mxu1 %v1490_v53 }
  0x75   :  { %1493 = vmatpush1.bf16.msra.mxu1 %v1492_v58 }
  0x76   :  { %1495 = vmatprep.subr.bf16.mxu1 %v1494_v59 }
  0x79   :  { %1497 = vmatpush1.bf16.msra.mxu1 %v1496_v0 }
  0x7a   :  { %1499 = vmatprep.subr.bf16.mxu1 %v1498_v17 }
  0x7d   :  { %1501 = vmatpush1.bf16.msra.mxu1 %v1500_v20 }
  0x80   :  { %400 = vmatmul.mubr.f32.vlgmr.msra.gmra.mrb[2].mxu1 %v199_v27 }
 0x133   :  { %v2008_v21 = vpop.f32.mrb[0].mxu1 }
 0x134   :  { %v406_v22 = vrot.slane %v2008_v21, 4  ;;  %v430_v23 = vmul.f32 %v2008_v21, %v2008_v21  ;;  %v2013_v25 = vpop.f32.mrb[1].mxu1 }
 0x135   :  { %v412_v26 = vrot.slane %v2013_v25, 4  ;;  %v431_v28 = vmul.f32 %v2013_v25, %v2013_v25 }
 0x136   :  { %v407_v29 = vadd.f32 %v406_v22, %v2008_v21  ;;  %v434_v30 = vrot.slane %v430_v23, 4 }
 0x137   :  { %v413_v31 = vadd.f32 %v412_v26, %v2013_v25  ;;  %v440_v27 = vrot.slane %v431_v28, 4 }
 0x138   :  { %v408_v32 = vrot.slane %v407_v29, 2  ;;  %v435_v33 = vadd.f32 %v434_v30, %v430_v23 }
 0x139   :  { %v414_v34 = vrot.slane %v413_v31, 2  ;;  %v441_v35 = vadd.f32 %v440_v27, %v431_v28 }
 0x13a   :  { %v409_v36 = vadd.f32 %v408_v32, %v407_v29  ;;  %v436_v37 = vrot.slane %v435_v33, 2 }
 0x13b   :  { %v415_v38 = vadd.f32 %v414_v34, %v413_v31  ;;  %v442_v39 = vrot.slane %v441_v35, 2 }
 0x13c   :  { %v410_v40 = vrot.slane %v409_v36, 1  ;;  %v437_v41 = vadd.f32 %v436_v37, %v435_v33 }
 0x13d   :  { %v416_v42 = vrot.slane %v415_v38, 1  ;;  %v443_v43 = vadd.f32 %v442_v39, %v441_v35 }
 0x13e   :  { %v411_v44 = vadd.f32 %v410_v40, %v409_v36  ;;  %v438_v45 = vrot.slane %v437_v41, 1 }
 0x13f   :  { %v417_v46 = vadd.f32 %v416_v42, %v415_v38  ;;  %v444_v47 = vrot.slane %v443_v43, 1 }
 0x140   :  { %v439_v48 = vadd.f32 %v438_v45, %v437_v41  ;;  %v2020_v49 = vmul.f32 0.125, %v411_v44 }
 0x141   :  { %v445_v50 = vadd.f32 %v444_v47, %v443_v43  ;;  %v2022_v51 = vmul.f32 0.125, %v417_v46 }
 0x142   :  { %v462_v52 = vmul.f32 0.125, %v439_v48  ;;  %v466_v53 = vmul.f32 %v2020_v49, %v2020_v49 }
 0x143   :  { %v463_v54 = vmul.f32 0.125, %v445_v50  ;;  %v467_v55 = vmul.f32 %v2022_v51, %v2022_v51 }
 0x144   :  { %v470_v56 = vsub.f32 %v462_v52, %v466_v53 }
 0x145   :  { %v471_v57 = vsub.f32 %v463_v54, %v467_v55 }
 0x146   :  { %v474_v58 = vmax.f32 %v470_v56, 0.0 }
 0x147   :  { %v475_v59 = vmax.f32 %v471_v57, 0.0 }
 0x148   :  { %v479_v60 = vadd.f32 1e-05, %v474_v58 }
 0x149   :  { %v480_v61 = vadd.f32 1e-05, %v475_v59 }
 0x14a   :  { %1698 = vrsqrt.f32 %v479_v60 }
 0x14b   :  { %1700 = vrsqrt.f32 %v480_v61 }
 0x153   :  { %v2028_v62 = vpop.f32.mrb[2].mxu1 }
 0x154   :  { %v1699_v63 = vpop.eup %1698  ;;  %v418_v0 = vrot.slane %v2028_v62, 4  ;;  %v432_v17 = vmul.f32 %v2028_v62, %v2028_v62  ;;  %v2033_v18 = vpop.f32.mrb[3].mxu1 }
 0x155   :  { %v1701_v19 = vpop.eup %1700  ;;  %v424_v20 = vrot.slane %v2033_v18, 4  ;;  %v433_v22 = vmul.f32 %v2033_v18, %v2033_v18 }
 0x156   :  { %v419_v23 = vadd.f32 %v418_v0, %v2028_v62  ;;  %v446_v26 = vrot.slane %v432_v17, 4  ;;  %v491_v28 = vcombine.low %v1699_v63, %v1701_v19  ;;  %v1797_v63 = vmov 1966171168  }
 0x157   :  { %v425_v29 = vadd.f32 %v424_v20, %v2033_v18  ;;  %v452_v30 = vrot.slane %v433_v22, 4  ;;  %v494_v0 = vunpack.c.l.s4 %v1797_v63 }
 0x158   :  { %v420_v31 = vrot.slane %v419_v23, 2  ;;  %v447_v27 = vadd.f32 %v446_v26, %v432_v17  ;;  %v496_v17 = vlaneseq }
 0x159   :  { %v426_v32 = vrot.slane %v425_v29, 2  ;;  %v453_v33 = vadd.f32 %v452_v30, %v433_v22  ;;  %v495_v19 = vunpack.c.0.s8 %v494_v0 }
 0x15a   :  { %v421_v34 = vadd.f32 %v420_v31, %v419_v23  ;;  %v448_v35 = vrot.slane %v447_v27, 2  ;;  %v497_v20 = vshrl.u32 %v496_v17, 7 }
 0x15b   :  { %v427_v36 = vadd.f32 %v426_v32, %v425_v29  ;;  %v454_v37 = vrot.slane %v453_v33, 2  ;;  %v478_v32 = vld [vmem:[%s2143_s2] sm:$0xf] }
 0x15c   :  { %v422_v38 = vrot.slane %v421_v34, 1  ;;  %v449_v39 = vadd.f32 %v448_v35, %v447_v27  ;;  %v2040_v23 = vsub.s32 %v495_v19, %v497_v20  ;;  %v2050_v35 = vsub.s32 1, %v497_v20 }
 0x15d   :  { %v428_v40 = vrot.slane %v427_v36, 1  ;;  %v455_v41 = vadd.f32 %v454_v37, %v453_v33  ;;  %v2047_v33 = vsub.s32 0, %v497_v20  ;;  %v533_v37 = vsub.s32 3, %v497_v20 }
 0x15e   :  { %v423_v42 = vadd.f32 %v422_v38, %v421_v34  ;;  %v450_v43 = vrot.slane %v449_v39, 1  ;;  %v499_v30 = vrot.slane %v491_v28, %v2040_v23 }
 0x15f   :  { %v429_v44 = vadd.f32 %v428_v40, %v427_v36  ;;  %v456_v45 = vrot.slane %v455_v41, 1  ;;  %v529_v36 = vsub.s32 2, %v497_v20 }
 0x160   :  { %v451_v46 = vadd.f32 %v450_v43, %v449_v39  ;;  %v460_v47 = vmul.f32 0.125, %v423_v42 }
 0x161   :  { %v457_v48 = vadd.f32 %v456_v45, %v455_v41  ;;  %v461_v50 = vmul.f32 0.125, %v429_v44 }
 0x162   :  { %v464_v52 = vmul.f32 0.125, %v451_v46  ;;  %v468_v53 = vmul.f32 %v460_v47, %v460_v47 }
 0x163   :  { %v465_v54 = vmul.f32 0.125, %v457_v48  ;;  %v469_v55 = vmul.f32 %v461_v50, %v461_v50 }
 0x164   :  { %v472_v56 = vsub.f32 %v464_v52, %v468_v53 }
 0x165   :  { %v473_v57 = vsub.f32 %v465_v54, %v469_v55 }
 0x166   :  { %v476_v58 = vmax.f32 %v472_v56, 0.0 }
 0x167   :  { %v477_v59 = vmax.f32 %v473_v57, 0.0 }
 0x168   :  { %v481_v60 = vadd.f32 1e-05, %v476_v58 }
 0x169   :  { %v482_v61 = vadd.f32 1e-05, %v477_v59 }
 0x16a   :  { %1702 = vrsqrt.f32 %v481_v60 }
 0x16b   :  { %1704 = vrsqrt.f32 %v482_v61 }
 0x174   :  { %v1703_v22 = vpop.eup %1702 }
 0x175   :  { %v1705_v26 = vpop.eup %1704 }
 0x176   :  { %v492_v29 = vcombine.low %v1703_v22, %v1705_v26 }
 0x178   :  { %v506_v31 = vrot.slane %v492_v29, %v2040_v23 }
 0x17a   :  { %v507_v27 = vcombine.low %v499_v30, %v506_v31 }
 0x17c   :  { %v514_v34 = vrot.slane %v507_v27, %v2040_v23 }
 0x17e   :  { %v516_v38 = vmul.f32 %v514_v34, %v478_v32 }
 0x180   :  { %v522_v39 = vrot.slane %v516_v38, %v2047_v33  ;;  %v526_v28 = vrot.slane %v516_v38, %v2050_v35  ;;  %v530_v40 = vrot.slane %v516_v38, %v529_v36  ;;  %v534_v41 = vrot.slane %v516_v38, %v533_v37 }
 0x182   :  { %v539_v42 = vmul.f32 %v522_v39, %v2020_v49  ;;  %v540_v43 = vmul.f32 %v526_v28, %v2022_v51  ;;  %v541_v44 = vmul.f32 %v530_v40, %v460_v47  ;;  %v542_v45 = vmul.f32 %v534_v41, %v461_v50  ;;  %v517_v49 = vld [vmem:[%s2144_s3] sm:$0xf] }
 0x183   :  { %v573_v46 = vmul.f32 %v522_v39, %v2008_v21  ;;  %v574_v48 = vmul.f32 %v526_v28, %v2013_v25  ;;  %v575_v52 = vmul.f32 %v530_v40, %v2028_v62  ;;  %v576_v53 = vmul.f32 %v534_v41, %v2033_v18 }
 0x184   :  { %v547_v54 = vcombine.low %v539_v42, %v540_v43  ;;  %v548_v55 = vcombine.low %v541_v44, %v542_v45 }
 0x186   :  { %v555_v56 = vrot.slane %v547_v54, %v2040_v23  ;;  %v562_v57 = vrot.slane %v548_v55, %v2040_v23 }
 0x188   :  { %v563_v58 = vcombine.low %v555_v56, %v562_v57 }
 0x18a   :  { %v570_v51 = vrot.slane %v563_v58, %v2040_v23 }
 0x18c   :  { %v572_v21 = vsub.f32 %v517_v49, %v570_v51 }
 0x18e   :  { %v581_v25 = vrot.slane %v572_v21, %v2047_v33  ;;  %v585_v62 = vrot.slane %v572_v21, %v2050_v35  ;;  %v589_v47 = vrot.slane %v572_v21, %v529_v36  ;;  %v593_v18 = vrot.slane %v572_v21, %v533_v37 }
 0x190   :  { %v2068_v50 = vadd.f32 %v581_v25, %v573_v46  ;;  %v599_v59 = vadd.f32 %v585_v62, %v574_v48  ;;  %v2070_v60 = vadd.f32 %v589_v47, %v575_v52  ;;  %v2072_v61 = vadd.f32 %v593_v18, %v576_v53 }
 0x192   :  { %v602_v63 = vmax.f32 %v2068_v50, 0.0  ;;  %v603_v0 = vmax.f32 %v599_v59, 0.0  ;;  %v604_v17 = vmax.f32 %v2070_v60, 0.0  ;;  %v605_v19 = vmax.f32 %v2072_v61, 0.0 }
 0x193   :  { %1783 = dma.done.wait [#allocation6], 16384 }
 0x194   :  { %1784 = vsyncadd [#allocation6], 4294950912  ;;  %802 = vmatprep.mubr.f32.mxu0 %v603_v0  ;;  %v611_v20 = vld [vmem:[#allocation2 + $0x8] sm:$0xff]  ;;  %v613_v22 = vld [vmem:[#allocation2 + $0x18] sm:$0xff] }
 0x195   :  { %v610_v26 = vld [vmem:[#allocation2] sm:$0xff]  ;;  %v1502_v29 = vpack.c.bf16 %v613_v22, %v611_v20  ;;  %v612_v30 = vld [vmem:[#allocation2 + $0x10] sm:$0xff]  ;;  %v615_v31 = vld [vmem:[#allocation2 + $0x28] sm:$0xff] }
 0x196   :  { %v617_v27 = vld [vmem:[#allocation2 + $0x38] sm:$0xff]  ;;  %v1504_v32 = vpack.c.bf16 %v612_v30, %v610_v26  ;;  %v614_v36 = vld [vmem:[#allocation2 + $0x20] sm:$0xff]  ;;  %v616_v37 = vld [vmem:[#allocation2 + $0x30] sm:$0xff] }
 0x197   :  { %v1506_v34 = vpack.c.bf16 %v617_v27, %v615_v31  ;;  %v619_v38 = vld [vmem:[#allocation2 + $0x48] sm:$0xff]  ;;  %1503 = vmatprep.subr.bf16.mxu0 %v1502_v29  ;;  %v621_v39 = vld [vmem:[#allocation2 + $0x58] sm:$0xff]  ;;  %v1508_v28 = vpack.c.bf16 %v616_v37, %v614_v36  ;;  %v618_v41 = vld [vmem:[#allocation2 + $0x40] sm:$0xff] }
 0x198   :  { %1505 = vmatpush1.bf16.msra.mxu0 %v1504_v32  ;;  %v1510_v40 = vpack.c.bf16 %v621_v39, %v619_v38  ;;  %v620_v42 = vld [vmem:[#allocation2 + $0x50] sm:$0xff]  ;;  %v623_v43 = vld [vmem:[#allocation2 + $0x68] sm:$0xff]  ;;  %v625_v44 = vld [vmem:[#allocation2 + $0x78] sm:$0xff] }
 0x199   :  { %1507 = vmatprep.subr.bf16.mxu0 %v1506_v34  ;;  %v1512_v45 = vpack.c.bf16 %v620_v42, %v618_v41  ;;  %v1514_v46 = vpack.c.bf16 %v625_v44, %v623_v43  ;;  %v622_v48 = vld [vmem:[#allocation2 + $0x60] sm:$0xff]  ;;  %v624_v52 = vld [vmem:[#allocation2 + $0x70] sm:$0xff]  ;;  %v627_v53 = vld [vmem:[#allocation2 + $0x88] sm:$0xff] }
 0x19a   :  { %v629_v54 = vld [vmem:[#allocation2 + $0x98] sm:$0xff]  ;;  %v1516_v55 = vpack.c.bf16 %v624_v52, %v622_v48  ;;  %v626_v57 = vld [vmem:[#allocation2 + $0x80] sm:$0xff]  ;;  %v628_v58 = vld [vmem:[#allocation2 + $0x90] sm:$0xff] }
 0x19b   :  { %v1518_v56 = vpack.c.bf16 %v629_v54, %v627_v53  ;;  %v631_v49 = vld [vmem:[#allocation2 + $0xa8] sm:$0xff]  ;;  %v633_v51 = vld [vmem:[#allocation2 + $0xb8] sm:$0xff]  ;;  %v1520_v21 = vpack.c.bf16 %v628_v58, %v626_v57  ;;  %v630_v62 = vld [vmem:[#allocation2 + $0xa0] sm:$0xff] }
 0x19c   :  { %1509 = vmatpush1.bf16.msra.mxu0 %v1508_v28  ;;  %v1522_v25 = vpack.c.bf16 %v633_v51, %v631_v49  ;;  %v632_v47 = vld [vmem:[#allocation2 + $0xb0] sm:$0xff]  ;;  %v635_v18 = vld [vmem:[#allocation2 + $0xc8] sm:$0xff]  ;;  %v637_v59 = vld [vmem:[#allocation2 + $0xd8] sm:$0xff] }
 0x19d   :  { %1511 = vmatprep.subr.bf16.mxu0 %v1510_v40  ;;  %v1524_v0 = vpack.c.bf16 %v632_v47, %v630_v62  ;;  %v1526_v20 = vpack.c.bf16 %v637_v59, %v635_v18  ;;  %v634_v22 = vld [vmem:[#allocation2 + $0xc0] sm:$0xff]  ;;  %v636_v26 = vld [vmem:[#allocation2 + $0xd0] sm:$0xff]  ;;  %v639_v29 = vld [vmem:[#allocation2 + $0xe8] sm:$0xff] }
 0x19e   :  { %v641_v30 = vld [vmem:[#allocation2 + $0xf8] sm:$0xff]  ;;  %v1528_v31 = vpack.c.bf16 %v636_v26, %v634_v22  ;;  %v638_v32 = vld [vmem:[#allocation2 + $0xe0] sm:$0xff]  ;;  %v640_v34 = vld [vmem:[#allocation2 + $0xf0] sm:$0xff] }
 0x19f   :  { %v1530_v27 = vpack.c.bf16 %v641_v30, %v639_v29  ;;  %v643_v36 = vld [vmem:[#allocation2 + $0x108] sm:$0xff]  ;;  %v645_v37 = vld [vmem:[#allocation2 + $0x118] sm:$0xff]  ;;  %v1532_v38 = vpack.c.bf16 %v640_v34, %v638_v32  ;;  %v642_v28 = vld [vmem:[#allocation2 + $0x100] sm:$0xff] }
 0x1a0   :  { %1513 = vmatpush1.bf16.msra.mxu0 %v1512_v45  ;;  %v1534_v39 = vpack.c.bf16 %v645_v37, %v643_v36  ;;  %v644_v40 = vld [vmem:[#allocation2 + $0x110] sm:$0xff]  ;;  %v647_v41 = vld [vmem:[#allocation2 + $0x128] sm:$0xff]  ;;  %v649_v42 = vld [vmem:[#allocation2 + $0x138] sm:$0xff] }
 0x1a1   :  { %1515 = vmatprep.subr.bf16.mxu0 %v1514_v46  ;;  %v1536_v43 = vpack.c.bf16 %v644_v40, %v642_v28  ;;  %v1538_v44 = vpack.c.bf16 %v649_v42, %v647_v41  ;;  %v646_v45 = vld [vmem:[#allocation2 + $0x120] sm:$0xff]  ;;  %v648_v46 = vld [vmem:[#allocation2 + $0x130] sm:$0xff]  ;;  %v651_v48 = vld [vmem:[#allocation2 + $0x148] sm:$0xff] }
 0x1a2   :  { %v653_v52 = vld [vmem:[#allocation2 + $0x158] sm:$0xff]  ;;  %v1540_v53 = vpack.c.bf16 %v648_v46, %v646_v45  ;;  %v655_v57 = vld [vmem:[#allocation2 + $0x168] sm:$0xff]  ;;  %v690_v61 = vld [vmem:[#allocation2 + $0x280] sm:$0xff] }
 0x1a3   :  { %v1542_v54 = vpack.c.bf16 %v653_v52, %v651_v48  ;;  %v657_v58 = vld [vmem:[#allocation2 + $0x178] sm:$0xff]  ;;  %v659_v62 = vld [vmem:[#allocation2 + $0x188] sm:$0xff] }
 0x1a4   :  { %1517 = vmatpush1.bf16.msra.mxu0 %v1516_v55  ;;  %v650_v55 = vld [vmem:[#allocation2 + $0x140] sm:$0xff]  ;;  %v1546_v51 = vpack.c.bf16 %v657_v58, %v655_v57  ;;  %v661_v47 = vld [vmem:[#allocation2 + $0x198] sm:$0xff]  ;;  %v663_v22 = vld [vmem:[#allocation2 + $0x1a8] sm:$0xff] }
 0x1a5   :  { %1519 = vmatprep.subr.bf16.mxu0 %v1518_v56  ;;  %v652_v56 = vld [vmem:[#allocation2 + $0x150] sm:$0xff]  ;;  %v1550_v59 = vpack.c.bf16 %v661_v47, %v659_v62  ;;  %v665_v26 = vld [vmem:[#allocation2 + $0x1b8] sm:$0xff]  ;;  %v667_v32 = vld [vmem:[#allocation2 + $0x1c8] sm:$0xff] }
 0x1a6   :  { %v1544_v49 = vpack.c.bf16 %v652_v56, %v650_v55  ;;  %v1554_v30 = vpack.c.bf16 %v665_v26, %v663_v22  ;;  %v669_v34 = vld [vmem:[#allocation2 + $0x1d8] sm:$0xff]  ;;  %v671_v28 = vld [vmem:[#allocation2 + $0x1e8] sm:$0xff] }
 0x1a7   :  { %v1558_v37 = vpack.c.bf16 %v669_v34, %v667_v32  ;;  %v673_v40 = vld [vmem:[#allocation2 + $0x1f8] sm:$0xff]  ;;  %v675_v45 = vld [vmem:[#allocation2 + $0x208] sm:$0xff] }
 0x1a8   :  { %1521 = vmatpush1.bf16.msra.mxu0 %v1520_v21  ;;  %v654_v21 = vld [vmem:[#allocation2 + $0x160] sm:$0xff]  ;;  %v1562_v42 = vpack.c.bf16 %v673_v40, %v671_v28  ;;  %v677_v46 = vld [vmem:[#allocation2 + $0x218] sm:$0xff]  ;;  %v679_v55 = vld [vmem:[#allocation2 + $0x228] sm:$0xff] }
 0x1a9   :  { %1523 = vmatprep.subr.bf16.mxu0 %v1522_v25  ;;  %v656_v25 = vld [vmem:[#allocation2 + $0x170] sm:$0xff]  ;;  %v1566_v52 = vpack.c.bf16 %v677_v46, %v675_v45  ;;  %v681_v56 = vld [vmem:[#allocation2 + $0x238] sm:$0xff]  ;;  %v695_v32 = vld [vmem:[#allocation2 + $0x2a8] sm:$0xff] }
 0x1aa   :  { %v1548_v18 = vpack.c.bf16 %v656_v25, %v654_v21  ;;  %v1570_v58 = vpack.c.bf16 %v681_v56, %v679_v55  ;;  %v683_v21 = vld [vmem:[#allocation2 + $0x248] sm:$0xff]  ;;  %v685_v25 = vld [vmem:[#allocation2 + $0x258] sm:$0xff] }
 0x1ab   :  { %v1574_v47 = vpack.c.bf16 %v685_v25, %v683_v21  ;;  %v693_v50 = vld [vmem:[#allocation2 + $0x298] sm:$0xff]  ;;  %v699_v28 = vld [vmem:[#allocation2 + $0x2c8] sm:$0xff] }
 0x1ac   :  { %1525 = vmatpush1.bf16.msra.mxu0 %v1524_v0  ;;  %v658_v0 = vld [vmem:[#allocation2 + $0x180] sm:$0xff]  ;;  %v697_v34 = vld [vmem:[#allocation2 + $0x2b8] sm:$0xff]  ;;  %v703_v45 = vld [vmem:[#allocation2 + $0x2e8] sm:$0xff] }
 0x1ad   :  { %1527 = vmatprep.subr.bf16.mxu0 %v1526_v20  ;;  %v660_v20 = vld [vmem:[#allocation2 + $0x190] sm:$0xff]  ;;  %v701_v40 = vld [vmem:[#allocation2 + $0x2d8] sm:$0xff]  ;;  %v707_v55 = vld [vmem:[#allocation2 + $0x308] sm:$0xff] }
 0x1ae   :  { %v1552_v29 = vpack.c.bf16 %v660_v20, %v658_v0  ;;  %v687_v0 = vld [vmem:[#allocation2 + $0x268] sm:$0xff]  ;;  %v689_v20 = vld [vmem:[#allocation2 + $0x278] sm:$0xff] }
 0x1af   :  { %v1578_v26 = vpack.c.bf16 %v689_v20, %v687_v0  ;;  %v705_v46 = vld [vmem:[#allocation2 + $0x2f8] sm:$0xff]  ;;  %v711_v21 = vld [vmem:[#allocation2 + $0x328] sm:$0xff] }
 0x1b0   :  { %1529 = vmatpush1.bf16.msra.mxu0 %v1528_v31  ;;  %v662_v31 = vld [vmem:[#allocation2 + $0x1a0] sm:$0xff]  ;;  %v709_v56 = vld [vmem:[#allocation2 + $0x318] sm:$0xff]  ;;  %v715_v0 = vld [vmem:[#allocation2 + $0x348] sm:$0xff] }
 0x1b1   :  { %1531 = vmatprep.subr.bf16.mxu0 %v1530_v27  ;;  %v664_v27 = vld [vmem:[#allocation2 + $0x1b0] sm:$0xff]  ;;  %v713_v25 = vld [vmem:[#allocation2 + $0x338] sm:$0xff] }
 0x1b2   :  { %v1556_v36 = vpack.c.bf16 %v664_v27, %v662_v31  ;;  %v691_v31 = vld [vmem:[#allocation2 + $0x288] sm:$0xff]  ;;  %v717_v20 = vld [vmem:[#allocation2 + $0x358] sm:$0xff] }
 0x1b3   :  { %v1582_v27 = vpack.c.bf16 %v693_v50, %v691_v31  ;;  %v719_v31 = vld [vmem:[#allocation2 + $0x368] sm:$0xff]  ;;  %v721_v50 = vld [vmem:[#allocation2 + $0x378] sm:$0xff] }
 0x1b4   :  { %1533 = vmatpush1.bf16.msra.mxu0 %v1532_v38  ;;  %v666_v38 = vld [vmem:[#allocation2 + $0x1c0] sm:$0xff] }
 0x1b5   :  { %1535 = vmatprep.subr.bf16.mxu0 %v1534_v39  ;;  %v668_v39 = vld [vmem:[#allocation2 + $0x1d0] sm:$0xff] }
 0x1b6   :  { %v1560_v41 = vpack.c.bf16 %v668_v39, %v666_v38  ;;  %v694_v38 = vld [vmem:[#allocation2 + $0x2a0] sm:$0xff]  ;;  %v696_v39 = vld [vmem:[#allocation2 + $0x2b0] sm:$0xff] }
 0x1b8   :  { %1537 = vmatpush1.bf16.msra.mxu0 %v1536_v43  ;;  %v670_v43 = vld [vmem:[#allocation2 + $0x1e0] sm:$0xff] }
 0x1b9   :  { %1539 = vmatprep.subr.bf16.mxu0 %v1538_v44  ;;  %v672_v44 = vld [vmem:[#allocation2 + $0x1f0] sm:$0xff] }
 0x1ba   :  { %v1564_v48 = vpack.c.bf16 %v672_v44, %v670_v43  ;;  %v698_v43 = vld [vmem:[#allocation2 + $0x2c0] sm:$0xff]  ;;  %v700_v44 = vld [vmem:[#allocation2 + $0x2d0] sm:$0xff] }
 0x1bc   :  { %1541 = vmatpush1.bf16.msra.mxu0 %v1540_v53  ;;  %v674_v53 = vld [vmem:[#allocation2 + $0x200] sm:$0xff] }
 0x1bd   :  { %1543 = vmatprep.subr.bf16.mxu0 %v1542_v54  ;;  %v676_v54 = vld [vmem:[#allocation2 + $0x210] sm:$0xff] }
 0x1be   :  { %v1568_v57 = vpack.c.bf16 %v676_v54, %v674_v53  ;;  %v702_v53 = vld [vmem:[#allocation2 + $0x2e0] sm:$0xff]  ;;  %v704_v54 = vld [vmem:[#allocation2 + $0x2f0] sm:$0xff] }
 0x1c0   :  { %1545 = vmatpush1.bf16.msra.mxu0 %v1544_v49  ;;  %v678_v49 = vld [vmem:[#allocation2 + $0x220] sm:$0xff] }
 0x1c1   :  { %1547 = vmatprep.subr.bf16.mxu0 %v1546_v51  ;;  %v680_v51 = vld [vmem:[#allocation2 + $0x230] sm:$0xff] }
 0x1c2   :  { %v1572_v62 = vpack.c.bf16 %v680_v51, %v678_v49  ;;  %v706_v49 = vld [vmem:[#allocation2 + $0x300] sm:$0xff]  ;;  %v708_v51 = vld [vmem:[#allocation2 + $0x310] sm:$0xff] }
 0x1c4   :  { %1549 = vmatpush1.bf16.msra.mxu0 %v1548_v18  ;;  %v682_v18 = vld [vmem:[#allocation2 + $0x240] sm:$0xff] }
 0x1c5   :  { %1551 = vmatprep.subr.bf16.mxu0 %v1550_v59  ;;  %v684_v59 = vld [vmem:[#allocation2 + $0x250] sm:$0xff] }
 0x1c6   :  { %v1576_v22 = vpack.c.bf16 %v684_v59, %v682_v18  ;;  %v710_v18 = vld [vmem:[#allocation2 + $0x320] sm:$0xff]  ;;  %v712_v59 = vld [vmem:[#allocation2 + $0x330] sm:$0xff] }
 0x1c8   :  { %1553 = vmatpush1.bf16.msra.mxu0 %v1552_v29  ;;  %v686_v29 = vld [vmem:[#allocation2 + $0x260] sm:$0xff] }
 0x1c9   :  { %1555 = vmatprep.subr.bf16.mxu0 %v1554_v30  ;;  %v688_v30 = vld [vmem:[#allocation2 + $0x270] sm:$0xff] }
 0x1cc   :  { %1557 = vmatpush1.bf16.msra.mxu0 %v1556_v36 }
 0x1cd   :  { %1559 = vmatprep.subr.bf16.mxu0 %v1558_v37  ;;  %v1586_v37 = vpack.c.bf16 %v697_v34, %v695_v32  ;;  %v723_v32 = vld [vmem:[#allocation2 + $0x388] sm:$0xff]  ;;  %v725_v34 = vld [vmem:[#allocation2 + $0x398] sm:$0xff] }
 0x1d0   :  { %1561 = vmatpush1.bf16.msra.mxu0 %v1560_v41  ;;  %v1588_v41 = vpack.c.bf16 %v696_v39, %v694_v38  ;;  %v722_v38 = vld [vmem:[#allocation2 + $0x380] sm:$0xff]  ;;  %v724_v39 = vld [vmem:[#allocation2 + $0x390] sm:$0xff] }
 0x1d1   :  { %1563 = vmatprep.subr.bf16.mxu0 %v1562_v42  ;;  %v1590_v42 = vpack.c.bf16 %v701_v40, %v699_v28  ;;  %v727_v28 = vld [vmem:[#allocation2 + $0x3a8] sm:$0xff]  ;;  %v729_v40 = vld [vmem:[#allocation2 + $0x3b8] sm:$0xff] }
 0x1d4   :  { %1565 = vmatpush1.bf16.msra.mxu0 %v1564_v48  ;;  %v1592_v48 = vpack.c.bf16 %v700_v44, %v698_v43  ;;  %v726_v43 = vld [vmem:[#allocation2 + $0x3a0] sm:$0xff]  ;;  %v728_v44 = vld [vmem:[#allocation2 + $0x3b0] sm:$0xff] }
 0x1d5   :  { %1567 = vmatprep.subr.bf16.mxu0 %v1566_v52  ;;  %v1594_v52 = vpack.c.bf16 %v705_v46, %v703_v45  ;;  %v731_v45 = vld [vmem:[#allocation2 + $0x3c8] sm:$0xff]  ;;  %v733_v46 = vld [vmem:[#allocation2 + $0x3d8] sm:$0xff] }
 0x1d7   :  { %803 = vmatmul.mubr.f32.vlgmr.msra.gmra.mrb[0].mxu0 %v602_v63  ;;  %v1580_v63 = vpack.c.bf16 %v688_v30, %v686_v29  ;;  %v714_v29 = vld [vmem:[#allocation2 + $0x340] sm:$0xff]  ;;  %v716_v30 = vld [vmem:[#allocation2 + $0x350] sm:$0xff] }
 0x1d8   :  { %1569 = vmatpush1.bf16.msra.mxu0 %v1568_v57  ;;  %873 = vmatprep.mubr.f32.mxu0 %v605_v19  ;;  %v692_v19 = vld [vmem:[#allocation2 + $0x290] sm:$0xff]  ;;  %v1596_v57 = vpack.c.bf16 %v704_v54, %v702_v53  ;;  %v730_v53 = vld [vmem:[#allocation2 + $0x3c0] sm:$0xff] }
 0x1d9   :  { %1571 = vmatprep.subr.bf16.mxu0 %v1570_v58  ;;  %v1584_v36 = vpack.c.bf16 %v692_v19, %v690_v61  ;;  %v1598_v58 = vpack.c.bf16 %v709_v56, %v707_v55  ;;  %v718_v61 = vld [vmem:[#allocation2 + $0x360] sm:$0xff]  ;;  %v720_v19 = vld [vmem:[#allocation2 + $0x370] sm:$0xff]  ;;  %v735_v55 = vld [vmem:[#allocation2 + $0x3e8] sm:$0xff] }
 0x1da   :  { %v732_v54 = vld [vmem:[#allocation2 + $0x3d0] sm:$0xff]  ;;  %v737_v56 = vld [vmem:[#allocation2 + $0x3f8] sm:$0xff] }
 0x1dc   :  { %1573 = vmatpush1.bf16.msra.mxu0 %v1572_v62  ;;  %v1600_v62 = vpack.c.bf16 %v708_v51, %v706_v49  ;;  %v734_v49 = vld [vmem:[#allocation2 + $0x3e0] sm:$0xff]  ;;  %v736_v51 = vld [vmem:[#allocation2 + $0x3f0] sm:$0xff] }
 0x1dd   :  { %1575 = vmatprep.subr.bf16.mxu0 %v1574_v47  ;;  %v1602_v47 = vpack.c.bf16 %v713_v25, %v711_v21  ;;  %v1628_v21 = vpack.c.bf16 %v736_v51, %v734_v49 }
 0x1e0   :  { %1577 = vmatpush1.bf16.msra.mxu0 %v1576_v22  ;;  %v1604_v22 = vpack.c.bf16 %v712_v59, %v710_v18 }
 0x1e1   :  { %1579 = vmatprep.subr.bf16.mxu0 %v1578_v26  ;;  %v1606_v26 = vpack.c.bf16 %v717_v20, %v715_v0 }
 0x1e4   :  { %1581 = vmatpush1.bf16.msra.mxu0 %v1580_v63  ;;  %v1608_v63 = vpack.c.bf16 %v716_v30, %v714_v29 }
 0x1e5   :  { %1583 = vmatprep.subr.bf16.mxu0 %v1582_v27  ;;  %v1610_v27 = vpack.c.bf16 %v721_v50, %v719_v31 }
 0x1e8   :  { %1585 = vmatpush1.bf16.msra.mxu0 %v1584_v36  ;;  %v1612_v36 = vpack.c.bf16 %v720_v19, %v718_v61 }
 0x1e9   :  { %1587 = vmatprep.subr.bf16.mxu0 %v1586_v37  ;;  %v1614_v37 = vpack.c.bf16 %v725_v34, %v723_v32 }
 0x1ec   :  { %1589 = vmatpush1.bf16.msra.mxu0 %v1588_v41  ;;  %v1616_v41 = vpack.c.bf16 %v724_v39, %v722_v38 }
 0x1ed   :  { %1591 = vmatprep.subr.bf16.mxu0 %v1590_v42  ;;  %v1618_v42 = vpack.c.bf16 %v729_v40, %v727_v28 }
 0x1f0   :  { %1593 = vmatpush1.bf16.msra.mxu0 %v1592_v48  ;;  %v1620_v48 = vpack.c.bf16 %v728_v44, %v726_v43 }
 0x1f1   :  { %1595 = vmatprep.subr.bf16.mxu0 %v1594_v52  ;;  %v1622_v52 = vpack.c.bf16 %v733_v46, %v731_v45 }
 0x1f4   :  { %1597 = vmatpush1.bf16.msra.mxu0 %v1596_v57  ;;  %v1624_v57 = vpack.c.bf16 %v732_v54, %v730_v53 }
 0x1f5   :  { %1599 = vmatprep.subr.bf16.mxu0 %v1598_v58  ;;  %v1626_v58 = vpack.c.bf16 %v737_v56, %v735_v55 }
 0x1f8   :  { %1601 = vmatpush1.bf16.msra.mxu0 %v1600_v62 }
 0x1f9   :  { %1603 = vmatprep.subr.bf16.mxu0 %v1602_v47 }
 0x1fc   :  { %1605 = vmatpush1.bf16.msra.mxu0 %v1604_v22 }
 0x1fd   :  { %1607 = vmatprep.subr.bf16.mxu0 %v1606_v26 }
 0x200   :  { %1609 = vmatpush1.bf16.msra.mxu0 %v1608_v63 }
 0x201   :  { %1611 = vmatprep.subr.bf16.mxu0 %v1610_v27 }
 0x204   :  { %1613 = vmatpush1.bf16.msra.mxu0 %v1612_v36 }
 0x205   :  { %1615 = vmatprep.subr.bf16.mxu0 %v1614_v37 }
 0x208   :  { %1617 = vmatpush1.bf16.msra.mxu0 %v1616_v41 }
 0x209   :  { %1619 = vmatprep.subr.bf16.mxu0 %v1618_v42 }
 0x20c   :  { %1621 = vmatpush1.bf16.msra.mxu0 %v1620_v48 }
 0x20d   :  { %1623 = vmatprep.subr.bf16.mxu0 %v1622_v52 }
 0x210   :  { %1625 = vmatpush1.bf16.msra.mxu0 %v1624_v57 }
 0x211   :  { %1627 = vmatprep.subr.bf16.mxu0 %v1626_v58 }
 0x214   :  { %1629 = vmatpush1.bf16.msra.mxu0 %v1628_v21 }
 0x217   :  { %874 = vmatmul.mubr.f32.vlgmr.msra.gmra.mrb[0].mxu0 %v604_v17 }
 0x2ea   :  { %v875_v25 = vpop.f32.mrb[0].mxu0 }
 0x2eb   :  { %v880_v62 = vrot.slane %v875_v25, 4  ;;  %v892_v47 = vmul.f32 %v875_v25, %v875_v25  ;;  %v877_v18 = vpop.f32.mrb[1].mxu0 }
 0x2ec   :  { %v886_v59 = vrot.slane %v877_v18, 4  ;;  %v893_v0 = vmul.f32 %v877_v18, %v877_v18 }
 0x2ed   :  { %v881_v20 = vadd.f32 %v880_v62, %v875_v25  ;;  %v894_v22 = vrot.slane %v892_v47, 4  ;;  %v916_v62 = vld [vmem:[%s2146_s5] sm:$0x3] }
 0x2ee   :  { %v887_v26 = vadd.f32 %v886_v59, %v877_v18  ;;  %v900_v29 = vrot.slane %v893_v0, 4 }
 0x2ef   :  { %v882_v30 = vrot.slane %v881_v20, 2  ;;  %v895_v31 = vadd.f32 %v894_v22, %v892_v47 }
 0x2f0   :  { %v888_v50 = vrot.slane %v887_v26, 2  ;;  %v901_v63 = vadd.f32 %v900_v29, %v893_v0 }
 0x2f1   :  { %v883_v27 = vadd.f32 %v882_v30, %v881_v20  ;;  %v896_v61 = vrot.slane %v895_v31, 2 }
 0x2f2   :  { %v889_v19 = vadd.f32 %v888_v50, %v887_v26  ;;  %v902_v32 = vrot.slane %v901_v63, 2 }
 0x2f3   :  { %v884_v60 = vrot.slane %v883_v27, 1  ;;  %v897_v17 = vadd.f32 %v896_v61, %v895_v31 }
 0x2f4   :  { %v890_v34 = vrot.slane %v889_v19, 1  ;;  %v903_v36 = vadd.f32 %v902_v32, %v901_v63  ;;  %v940_v63 = vld [vmem:[%s2147_s6] sm:$0x3] }
 0x2f5   :  { %v885_v37 = vadd.f32 %v884_v60, %v883_v27  ;;  %v898_v38 = vrot.slane %v897_v17, 1 }
 0x2f6   :  { %v891_v39 = vadd.f32 %v890_v34, %v889_v19  ;;  %v904_v28 = vrot.slane %v903_v36, 1 }
 0x2f7   :  { %v899_v40 = vadd.f32 %v898_v38, %v897_v17  ;;  %v906_v41 = vmul.f32 0.125, %v885_v37 }
 0x2f8   :  { %v905_v42 = vadd.f32 %v904_v28, %v903_v36  ;;  %v907_v43 = vmul.f32 0.125, %v891_v39 }
 0x2f9   :  { %v908_v44 = vmul.f32 0.125, %v899_v40  ;;  %v910_v45 = vmul.f32 %v906_v41, %v906_v41 }
 0x2fa   :  { %v909_v46 = vmul.f32 0.125, %v905_v42  ;;  %v911_v48 = vmul.f32 %v907_v43, %v907_v43 }
 0x2fb   :  { %v912_v52 = vsub.f32 %v908_v44, %v910_v45 }
 0x2fc   :  { %v913_v53 = vsub.f32 %v909_v46, %v911_v48 }
 0x2fd   :  { %v914_v54 = vmax.f32 %v912_v52, 0.0 }
 0x2fe   :  { %v915_v55 = vmax.f32 %v913_v53, 0.0 }
 0x2ff   :  { %v917_v56 = vadd.f32 1e-05, %v914_v54 }
 0x300   :  { %v918_v57 = vadd.f32 1e-05, %v915_v55 }
 0x301   :  { %1706 = vrsqrt.f32 %v917_v56 }
 0x302   :  { %1708 = vrsqrt.f32 %v918_v57 }
 0x30b   :  { %v1707_v58 = vpop.eup %1706 }
 0x30c   :  { %v1709_v49 = vpop.eup %1708 }
 0x30d   :  { %v923_v51 = vcombine.low %v1707_v58, %v1709_v49 }
 0x30f   :  { %v930_v21 = vrot.slane %v923_v51, %v2040_v23 }
 0x311   :  { %v937_v47 = vrot.slane %v930_v21, %v2040_v23 }
 0x313   :  { %v939_v59 = vmul.f32 %v937_v47, %v916_v62 }
 0x315   :  { %v945_v0 = vrot.slane %v939_v59, %v2047_v33  ;;  %v949_v20 = vrot.slane %v939_v59, %v2050_v35 }
 0x317   :  { %v952_v22 = vmul.f32 %v945_v0, %v906_v41  ;;  %v953_v26 = vmul.f32 %v949_v20, %v907_v43  ;;  %v973_v29 = vmul.f32 %v945_v0, %v875_v25  ;;  %v974_v30 = vmul.f32 %v949_v20, %v877_v18 }
 0x319   :  { %v956_v31 = vcombine.low %v952_v22, %v953_v26 }
 0x31b   :  { %v963_v50 = vrot.slane %v956_v31, %v2040_v23 }
 0x31d   :  { %v970_v27 = vrot.slane %v963_v50, %v2040_v23 }
 0x31f   :  { %v972_v61 = vsub.f32 %v940_v63, %v970_v27 }
 0x321   :  { %v979_v19 = vrot.slane %v972_v61, %v2047_v33  ;;  %v983_v32 = vrot.slane %v972_v61, %v2050_v35 }
 0x323   :  { %v2097_v60 = vadd.f32 %v979_v19, %v973_v29  ;;  %v987_v17 = vadd.f32 %v983_v32, %v974_v30 }
 0x325   :  { %v988_v25 = vmax.f32 %v2097_v60, 0.0  ;;  %v989_v18 = vmax.f32 %v987_v17, 0.0 }
 0x326   :  { %1785 = dma.done.wait [#allocation6 + $0x1], 4096 }
 0x327   :  { %1786 = vsyncadd [#allocation6 + $0x1], 4294963200  ;;  %1089 = vmatprep.mubr.f32.mxu1 %v989_v18  ;;  %v1009_v34 = vld [vmem:[#allocation3 + $0x80] sm:$0xff]  ;;  %v1010_v36 = vld [vmem:[#allocation3 + $0x88] sm:$0xff] }
 0x328   :  { %v993_v37 = vld [vmem:[#allocation3] sm:$0xff]  ;;  %v1630_v38 = vpack.c.bf16 %v1010_v36, %v1009_v34  ;;  %v994_v39 = vld [vmem:[#allocation3 + $0x8] sm:$0xff]  ;;  %v1011_v23 = vld [vmem:[#allocation3 + $0x90] sm:$0xff] }
 0x329   :  { %v1012_v28 = vld [vmem:[#allocation3 + $0x98] sm:$0xff]  ;;  %v1632_v40 = vpack.c.bf16 %v994_v39, %v993_v37  ;;  %v995_v42 = vld [vmem:[#allocation3 + $0x10] sm:$0xff]  ;;  %v1013_v43 = vld [vmem:[#allocation3 + $0xa0] sm:$0xff] }
 0x32a   :  { %v1634_v41 = vpack.c.bf16 %v1012_v28, %v1011_v23  ;;  %v996_v35 = vld [vmem:[#allocation3 + $0x18] sm:$0xff]  ;;  %1631 = vmatprep.subr.bf16.mxu1 %v1630_v38  ;;  %v1014_v44 = vld [vmem:[#allocation3 + $0xa8] sm:$0xff]  ;;  %v997_v48 = vld [vmem:[#allocation3 + $0x20] sm:$0xff] }
 0x32b   :  { %1633 = vmatpush3.bf16.msra.mxu1 %v1632_v40  ;;  %v1636_v45 = vpack.c.bf16 %v996_v35, %v995_v42  ;;  %v1638_v46 = vpack.c.bf16 %v1014_v44, %v1013_v43  ;;  %v998_v52 = vld [vmem:[#allocation3 + $0x28] sm:$0xff]  ;;  %v1015_v53 = vld [vmem:[#allocation3 + $0xb0] sm:$0xff]  ;;  %v1016_v54 = vld [vmem:[#allocation3 + $0xb8] sm:$0xff] }
 0x32c   :  { %1635 = vmatprep.subr.bf16.mxu1 %v1634_v41  ;;  %v1640_v55 = vpack.c.bf16 %v998_v52, %v997_v48  ;;  %v1642_v56 = vpack.c.bf16 %v1016_v54, %v1015_v53  ;;  %v999_v57 = vld [vmem:[#allocation3 + $0x30] sm:$0xff]  ;;  %v1000_v58 = vld [vmem:[#allocation3 + $0x38] sm:$0xff]  ;;  %v1017_v49 = vld [vmem:[#allocation3 + $0xc0] sm:$0xff] }
 0x32d   :  { %v1018_v51 = vld [vmem:[#allocation3 + $0xc8] sm:$0xff]  ;;  %v1644_v21 = vpack.c.bf16 %v1000_v58, %v999_v57  ;;  %v1001_v47 = vld [vmem:[#allocation3 + $0x40] sm:$0xff]  ;;  %v1019_v0 = vld [vmem:[#allocation3 + $0xd0] sm:$0xff] }
 0x32e   :  { %v1646_v62 = vpack.c.bf16 %v1018_v51, %v1017_v49  ;;  %v1002_v59 = vld [vmem:[#allocation3 + $0x48] sm:$0xff]  ;;  %v1020_v20 = vld [vmem:[#allocation3 + $0xd8] sm:$0xff]  ;;  %v1003_v29 = vld [vmem:[#allocation3 + $0x50] sm:$0xff] }
 0x32f   :  { %1637 = vmatpush3.bf16.msra.mxu1 %v1636_v45  ;;  %v1648_v22 = vpack.c.bf16 %v1002_v59, %v1001_v47  ;;  %v1650_v26 = vpack.c.bf16 %v1020_v20, %v1019_v0  ;;  %v1004_v30 = vld [vmem:[#allocation3 + $0x58] sm:$0xff]  ;;  %v1021_v31 = vld [vmem:[#allocation3 + $0xe0] sm:$0xff]  ;;  %v1022_v50 = vld [vmem:[#allocation3 + $0xe8] sm:$0xff] }
 0x330   :  { %1639 = vmatprep.subr.bf16.mxu1 %v1638_v46  ;;  %v1652_v63 = vpack.c.bf16 %v1004_v30, %v1003_v29  ;;  %v1654_v27 = vpack.c.bf16 %v1022_v50, %v1021_v31  ;;  %v1005_v61 = vld [vmem:[#allocation3 + $0x60] sm:$0xff]  ;;  %v1006_v19 = vld [vmem:[#allocation3 + $0x68] sm:$0xff]  ;;  %v1023_v32 = vld [vmem:[#allocation3 + $0xf0] sm:$0xff]  ;;  %v1663_v31 = vpack.c.bf16 %v1928_v2, %v1923_v1 }
 0x331   :  { %v1024_v17 = vld [vmem:[#allocation3 + $0xf8] sm:$0xff]  ;;  %v1656_v18 = vpack.c.bf16 %v1006_v19, %v1005_v61  ;;  %v1007_v36 = vld [vmem:[#allocation3 + $0x70] sm:$0xff]  ;;  %v1113_v51 = vld [vmem:[%s2149_s8] sm:$0x1] }
 0x332   :  { %v1658_v34 = vpack.c.bf16 %v1024_v17, %v1023_v32  ;;  %v1008_v37 = vld [vmem:[#allocation3 + $0x78] sm:$0xff]  ;;  %v1117_v47 = vld [vmem:[%s2150_s9] sm:$0x1] }
 0x333   :  { %1641 = vmatpush3.bf16.msra.mxu1 %v1640_v55  ;;  %v1660_v38 = vpack.c.bf16 %v1008_v37, %v1007_v36 }
 0x334   :  { %1643 = vmatprep.subr.bf16.mxu1 %v1642_v56 }
 0x337   :  { %1645 = vmatpush3.bf16.msra.mxu1 %v1644_v21 }
 0x338   :  { %1647 = vmatprep.subr.bf16.mxu1 %v1646_v62 }
 0x33b   :  { %1649 = vmatpush3.bf16.msra.mxu1 %v1648_v22 }
 0x33c   :  { %1651 = vmatprep.subr.bf16.mxu1 %v1650_v26 }
 0x33f   :  { %1653 = vmatpush3.bf16.msra.mxu1 %v1652_v63 }
 0x340   :  { %1655 = vmatprep.subr.bf16.mxu1 %v1654_v27 }
 0x343   :  { %1657 = vmatpush3.bf16.msra.mxu1 %v1656_v18 }
 0x344   :  { %1659 = vmatprep.subr.bf16.mxu1 %v1658_v34 }
 0x347   :  { %1661 = vmatpush3.bf16.msra.mxu1 %v1660_v38 }
 0x34a   :  { %1090 = vmatmul.mubr.f32.vlgmr.msra.gmra.mrb[4].mxu1 %v988_v25 }
 0x41d   :  { %v1383_v39 = vpop.f32.mrb[4].mxu1 }
 0x41e   :  { %v1384_v23 = vpop.f32.mrb[5].mxu1 }
 0x41f   :  { %v1385_v28 = vadd.f32 %v1384_v23, %v1383_v39 }
 0x421   :  { %v1095_v40 = vrot.slane %v1385_v28, 4  ;;  %v1101_v41 = vmul.f32 %v1385_v28, %v1385_v28 }
 0x423   :  { %v1096_v42 = vadd.f32 %v1385_v28, %v1095_v40  ;;  %v1102_v35 = vrot.slane %v1101_v41, 4 }
 0x425   :  { %v1097_v43 = vrot.slane %v1096_v42, 2  ;;  %v1103_v44 = vadd.f32 %v1102_v35, %v1101_v41 }
 0x427   :  { %v1098_v45 = vadd.f32 %v1097_v43, %v1096_v42  ;;  %v1104_v46 = vrot.slane %v1103_v44, 2 }
 0x429   :  { %v1099_v48 = vrot.slane %v1098_v45, 1  ;;  %v1105_v52 = vadd.f32 %v1104_v46, %v1103_v44 }
 0x42b   :  { %v1100_v53 = vadd.f32 %v1099_v48, %v1098_v45  ;;  %v1106_v54 = vrot.slane %v1105_v52, 1 }
 0x42d   :  { %v1107_v55 = vadd.f32 %v1106_v54, %v1105_v52  ;;  %v1108_v56 = vmul.f32 0.125, %v1100_v53 }
 0x42f   :  { %v1109_v57 = vmul.f32 0.125, %v1107_v55  ;;  %v1110_v60 = vmul.f32 %v1108_v56, %v1108_v56 }
 0x431   :  { %v1111_v25 = vsub.f32 %v1109_v57, %v1110_v60 }
 0x433   :  { %v1112_v58 = vmax.f32 %v1111_v25, 0.0 }
 0x435   :  { %v1114_v49 = vadd.f32 1e-05, %v1112_v58 }
 0x437   :  { %1710 = vrsqrt.f32 %v1114_v49 }
 0x441   :  { %v1711_v21 = vpop.eup %1710 }
 0x442   :  { %v1116_v62 = vmul.f32 %v1711_v21, %v1113_v51 }
 0x444   :  { %v1118_v59 = vmul.f32 %v1116_v62, %v1108_v56  ;;  %v1124_v0 = vrot.slane %v1116_v62, %v2047_v33 }
 0x446   :  { %v1119_v20 = vsub.f32 %v1117_v47, %v1118_v59  ;;  %v1126_v22 = vmul.f32 %v1385_v28, %v1124_v0 }
 0x448   :  { %v1131_v26 = vrot.slane %v1119_v20, %v2047_v33 }
 0x44a   :  { %v1133_v29 = vadd.f32 %v1131_v26, %v1126_v22 }
 0x44c   :  { %v1134_v30 = vmax.f32 %v1133_v29, 0.0 }
 0x44d   :  { %1787 = dma.done.wait [#allocation6 + $0x2], 2048 }
 0x44e   :  { %1788 = vsyncadd [#allocation6 + $0x2], 4294965248  ;;  %v1798_v50 = vmov 0.0|0.0   ;;  %v1666_v63 = vpack.c.bf16 %v1938_v4, %v1933_v3  ;;  %vm1799_vm0 = vmmov 0   ;;  %v1669_v27 = vpack.c.bf16 %v1948_v6, %v1943_v5  ;;  %v1245_v28 = vld [vmem:[%s2152_s11] sm:$0x1] }
 0x44f   :  { %1662 = vmatprep.subr.bf16.mxu1 %v1798_v50  ;;  %1435 = vmatprep.mubr.msk.f32.mxu1 %vm1799_vm0, %v1796_v24  ;;  %v1672_v1 = vpack.c.bf16 %v1958_v8, %v1953_v7  ;;  %v1675_v2 = vpack.c.bf16 %v1968_v10, %v1963_v9  ;;  %v1678_v3 = vpack.c.bf16 %v1978_v12, %v1973_v11  ;;  %vm1224_vm1 = vcmask 523264   ;;  %v1249_v42 = vld [vmem:[%s2153_s12] sm:$0x1] }
 0x450   :  { %1664 = vmatpush3.bf16.msra.mxu1 %v1663_v31  ;;  %v1681_v4 = vpack.c.bf16 %v1988_v14, %v1983_v13  ;;  %v1684_v5 = vpack.c.bf16 %v1998_v16, %v1993_v15 }
 0x451   :  { %1665 = vmatprep.subr.bf16.mxu1 %v1798_v50 }
 0x454   :  { %1667 = vmatpush3.bf16.msra.mxu1 %v1666_v63 }
 0x455   :  { %1668 = vmatprep.subr.bf16.mxu1 %v1798_v50 }
 0x458   :  { %1670 = vmatpush3.bf16.msra.mxu1 %v1669_v27 }
 0x459   :  { %1671 = vmatprep.subr.bf16.mxu1 %v1798_v50 }
 0x45c   :  { %1673 = vmatpush3.bf16.msra.mxu1 %v1672_v1 }
 0x45d   :  { %1674 = vmatprep.subr.bf16.mxu1 %v1798_v50 }
 0x460   :  { %1676 = vmatpush3.bf16.msra.mxu1 %v1675_v2 }
 0x461   :  { %1677 = vmatprep.subr.bf16.mxu1 %v1798_v50 }
 0x464   :  { %1679 = vmatpush3.bf16.msra.mxu1 %v1678_v3 }
 0x465   :  { %1680 = vmatprep.subr.bf16.mxu1 %v1798_v50 }
 0x468   :  { %1682 = vmatpush3.bf16.msra.mxu1 %v1681_v4 }
 0x469   :  { %1683 = vmatprep.subr.bf16.mxu1 %v1798_v50 }
 0x46c   :  { %1685 = vmatpush3.bf16.msra.mxu1 %v1684_v5 }
 0x46f   :  { %1436 = vmatmul.mubr.f32.vlgmr.msra.gmra.mrb[6].mxu1 %v1134_v30 }
 0x542   :  { %v1220_v6 = vpop.f32.mrb[6].mxu1 }
 0x543   :  { %v1225_v7 = vsel %vm1224_vm1, %v1220_v6, 0.0  ;;  %v1232_v8 = vmul.f32 %v1220_v6, %v1220_v6  ;;  %v1437_v9 = vpop.f32.mrb[7].mxu1 }
 0x544   :  { %v1226_v10 = vrot.slane %v1225_v7, 4 }
 0x545   :  { %v1233_v11 = vsel %vm1224_vm1, %v1232_v8, 0.0 }
 0x546   :  { %v1227_v12 = vadd.f32 %v1226_v10, %v1225_v7  ;;  %v1234_v24 = vrot.slane %v1233_v11, 4 }
 0x548   :  { %v1228_v13 = vrot.slane %v1227_v12, 2  ;;  %v1235_v14 = vadd.f32 %v1234_v24, %v1233_v11 }
 0x54a   :  { %v1229_v61 = vadd.f32 %v1228_v13, %v1227_v12  ;;  %v1236_v19 = vrot.slane %v1235_v14, 2 }
 0x54c   :  { %v1230_v32 = vrot.slane %v1229_v61, 1  ;;  %v1237_v15 = vadd.f32 %v1236_v19, %v1235_v14 }
 0x54e   :  { %v1231_v16 = vadd.f32 %v1230_v32, %v1229_v61  ;;  %v1238_v17 = vrot.slane %v1237_v15, 1 }
 0x550   :  { %v1239_v18 = vadd.f32 %v1238_v17, %v1237_v15  ;;  %v1240_v34 = vmul.f32 0.125, %v1231_v16 }
 0x552   :  { %v1241_v36 = vmul.f32 0.125, %v1239_v18  ;;  %v1242_v37 = vmul.f32 %v1240_v34, %v1240_v34 }
 0x554   :  { %v1243_v38 = vsub.f32 %v1241_v36, %v1242_v37 }
 0x556   :  { %v1244_v39 = vmax.f32 %v1243_v38, 0.0 }
 0x558   :  { %v1246_v23 = vadd.f32 1e-05, %v1244_v39 }
 0x55a   :  { %1712 = vrsqrt.f32 %v1246_v23 }
 0x564   :  { %v1713_v40 = vpop.eup %1712 }
 0x565   :  { %v1248_v41 = vmul.f32 %v1713_v40, %v1245_v28 }
 0x567   :  { %v1250_v35 = vmul.f32 %v1248_v41, %v1240_v34  ;;  %v1256_v43 = vrot.slane %v1248_v41, %v2047_v33 }
 0x569   :  { %v1251_v44 = vsub.f32 %v1249_v42, %v1250_v35  ;;  %v1258_v45 = vmul.f32 %v1256_v43, %v1220_v6 }
 0x56b   :  { %v1263_v46 = vrot.slane %v1251_v44, %v2047_v33 }
 0x56d   :  { %v1265_v48 = vadd.f32 %v1263_v46, %v1258_v45 }
 0x56f   :  { %v1266_v52 = vmax.f32 %v1265_v48, 0.0 }
 0x570   :  { %1789 = dma.done.wait [#allocation6 + $0x3], 16 }
 0x571   :  { %1790 = vsyncadd [#allocation6 + $0x3], 4294967280  ;;  %v1345_v53 = vld [vmem:[#allocation5] ss:$0 sm:$0xff]  ;;  %v1800_v56 = vmov 0  }
 0x572   :  { %v1277_v54 = vmul.f32 %v1345_v53, %v1266_v52  ;;  %1714 = vset.pattern.permute.xlu0 %v1800_v56  ;;  %v1346_v57 = vld [vmem:[#allocation7] ss:$0 sm:$0xff] }
 0x574   :  { %v1278_v55 = vsel %vm1224_vm1, %v1277_v54, 0.0 }
 0x575   :  { %1279 = vadd.xlane.f32.xlu0 %v1278_v55 }
 0x602   :  { %v1280_v60 = vpop.xlane.xlu0 %1279 }
 0x603   :  { %v1288_v25 = vadd.f32 %v1346_v57, %v1280_v60 }
 0x605   :  { %1291 = vperm.xlu0 %1714, %v1288_v25  }
 0x684   :  { %v1292_v58 = vpop.permute.xlu0 %1291 }
 0x685   :  { %1294 = vst [vmem:[%s2156_s15] sm:$0xff] %v1292_v58 }
 0x686   :  { %1299 = vsyncpa [#allocation9], 1 }
 0x687   :  { %1300 = vsyncmov [#allocation6] }
 0x68a   :  { %s1301_s21 = vpop.sfrf %1300 }
 0x68b   :  { %p1347_p10 = scmp.ne.s32.totalorder %s1301_s21, 0 }
 0x68d   :  { %1305 = shalt.err (%p1347_p10)  }
 0x68e   :  { %1307 = vsyncmov [#allocation6 + $0x1] }
 0x691   :  { %s1308_s29 = vpop.sfrf %1307 }
 0x692   :  { %p1348_p11 = scmp.ne.s32.totalorder %s1308_s29, 0 }
 0x694   :  { %1312 = shalt.err (%p1348_p11)  }
 0x695   :  { %1314 = vsyncmov [#allocation6 + $0x2] }
 0x698   :  { %s1315_s30 = vpop.sfrf %1314 }
 0x699   :  { %p1349_p12 = scmp.ne.s32.totalorder %s1315_s30, 0 }
 0x69b   :  { %1319 = shalt.err (%p1349_p12)  }
 0x69c   :  { %1321 = vsyncmov [#allocation6 + $0x3] }
 0x69f   :  { %s1322_s7 = vpop.sfrf %1321 }
 0x6a0   :  { %p1350_p13 = scmp.ne.s32.totalorder %s1322_s7, 0 }
 0x6a2   :  { %1326 = shalt.err (%p1350_p13)  }

</bundles_post_ra>
